<compile_context>
chip_gen: v7x
topology: tpu7x:2x2x1
jax: 0.10.0
libtpu: 0.0.40
codegen_flags: <defaults>
</compile_context>

<pallas_src>
import functools
import math

import jax
import jax.numpy as jnp
from jax.experimental import pallas as pl
from jax.experimental.pallas import tpu as pltpu


def _layer_norm(x, gamma, beta, eps=1e-5):
    mu = jnp.mean(x, axis=-1, keepdims=True)
    xc = x - mu
    var = jnp.mean(xc * xc, axis=-1, keepdims=True)
    inv = jax.lax.rsqrt(var + eps)                      # EUP rsqrt
    return xc * inv * gamma + beta


def fused_encoder_kernel(x_ref,
                         wqkv_ref, bqkv_ref, wo_ref, bo_ref,
                         ln1g_ref, ln1b_ref,
                         w1_ref, b1_ref, w2_ref, b2_ref,
                         ln2g_ref, ln2b_ref,
                         out_ref, ctx_ref, *, nheads):
    """Grid = (batch_block, layer): one post-LN encoder layer per step.

    The activations of the TB batch elements of this block live in `out_ref`
    (VMEM-resident: its block index is constant along the layer axis).
    """
    layer = pl.program_id(1)
    num_layers = pl.num_programs(1)
    TB, S, D = out_ref.shape
    hd = D // nheads
    T = TB * S
    bf16 = jnp.bfloat16
    f32 = jnp.float32

    @pl.when(layer == 0)
    def _():
        out_ref[...] = x_ref[...]

    x2d = out_ref[...].reshape(T, D)                            # (T, D) f32

    # --- fused QKV projection: one full-width matmul (scale folded into q) --
    qkv = jnp.dot(x2d.astype(bf16), wqkv_ref[...],
                  preferred_element_type=f32) + bqkv_ref[...]   # (T, 3D) f32
    qkv_b = qkv.astype(bf16)                                    # one cast

    # --- attention: batched over the TB batch dim, static loop over heads ---
    for h in range(nheads):
        q_h = qkv_b[:, h * hd:(h + 1) * hd].reshape(TB, S, hd)
        k_h = qkv_b[:, D + h * hd:D + (h + 1) * hd].reshape(TB, S, hd)
        v_h = qkv_b[:, 2 * D + h * hd:2 * D + (h + 1) * hd].reshape(TB, S, hd)
        s = jnp.einsum('bqd,bkd->bqk', q_h, k_h,
                       preferred_element_type=f32)              # (TB, S, S)
        m = jnp.max(s, axis=-1, keepdims=True)
        e = jnp.exp(s - m)
        p = e * pl.reciprocal(jnp.sum(e, axis=-1, keepdims=True), approx=True)
        c = jnp.einsum('bqk,bkd->bqd', p.astype(bf16), v_h,
                       preferred_element_type=f32)              # (TB, S, hd)
        ctx_ref[:, h * hd:(h + 1) * hd] = c.reshape(T, hd)      # lane slice

    # --- fused output projection: full 128-deep contraction ---
    attn = jnp.dot(ctx_ref[...].astype(bf16), wo_ref[...],
                   preferred_element_type=f32) + bo_ref[...]    # (T, D)

    # --- residual + LayerNorm1 (post-norm) ---
    y = _layer_norm(x2d + attn, ln1g_ref[...], ln1b_ref[...])

    # --- feed-forward: linear -> ReLU -> linear ---
    h1 = jnp.dot(y.astype(bf16), w1_ref[...],
                 preferred_element_type=f32) + b1_ref[...]
    h1 = jnp.maximum(h1, 0.0)
    h2 = jnp.dot(h1.astype(bf16), w2_ref[...],
                 preferred_element_type=f32) + b2_ref[...]

    # --- residual + LayerNorm2 ---
    z = _layer_norm(y + h2, ln2g_ref[...], ln2b_ref[...])
    out_ref[...] = z.reshape(TB, S, D)     # carry to next layer / final store


def _pack_params(layer_params, nheads):
    """Stack per-layer params (leading L dim), fuse Wq|Wk|Wv into one (D, 3D)
    weight, fold the 1/sqrt(hd) score scale into the q slice, cast matmul
    weights to bf16 — all in plain JAX."""
    D = layer_params[0]["wq_t"].shape[0]
    hd = D // nheads
    scale = 1.0 / math.sqrt(hd)
    bf16 = jnp.bfloat16

    def stack(fn, dtype=jnp.float32):
        return jnp.stack([fn(p) for p in layer_params]).astype(dtype)

    return dict(
        wqkv=stack(lambda p: jnp.concatenate(
            [p["wq_t"] * scale, p["wk_t"], p["wv_t"]], axis=1), bf16),
        bqkv=stack(lambda p: jnp.concatenate(
            [p["bq"] * scale, p["bk"], p["bv"]], axis=1)),
        wo=stack(lambda p: p["wo_t"], bf16),
        bo=stack(lambda p: p["bo"]),
        ln1g=stack(lambda p: p["ln1_g"]), ln1b=stack(lambda p: p["ln1_b"]),
        w1=stack(lambda p: p["w1_t"], bf16), b1=stack(lambda p: p["b1"]),
        w2=stack(lambda p: p["w2_t"], bf16), b2=stack(lambda p: p["b2"]),
        ln2g=stack(lambda p: p["ln2_g"]), ln2b=stack(lambda p: p["ln2_b"]),
    )


@functools.partial(jax.jit, static_argnums=(2, 3))
def cross_sectional_transformer(x_sbd, layer_params, nheads, batch_block=32):
    """Equivalent of CrossSectionalTransformer.forward(x); x: (S, B, D)."""
    S, B, D = x_sbd.shape
    L = len(layer_params)
    F = layer_params[0]["w1_t"].shape[1]
    assert D % nheads == 0

    TB = min(batch_block, B)                    # batch elements per grid step
    Bp = ((B + TB - 1) // TB) * TB              # pad B to a multiple of TB
    BB = Bp // TB

    xb = jnp.transpose(x_sbd, (1, 0, 2)).astype(jnp.float32)    # (B, S, D)
    if Bp != B:
        xb = jnp.pad(xb, ((0, Bp - B), (0, 0), (0, 0)))
    pk = _pack_params(layer_params, nheads)

    def per_layer(shape):
        nd = len(shape)
        return pl.BlockSpec((None,) + tuple(shape),
                            lambda bb, l, nd=nd: (l,) + (0,) * nd)

    x_spec = pl.BlockSpec((TB, S, D), lambda bb, l: (bb, 0, 0))
    out_spec = pl.BlockSpec((TB, S, D), lambda bb, l: (bb, 0, 0))

    in_specs = [
        x_spec,                                 # x
        per_layer((D, 3 * D)),                  # wqkv (scale folded into q)
        per_layer((1, 3 * D)),                  # bqkv
        per_layer((D, D)),                      # wo
        per_layer((1, D)),                      # bo
        per_layer((1, D)), per_layer((1, D)),   # ln1 gamma / beta
        per_layer((D, F)), per_layer((1, F)),   # w1, b1
        per_layer((F, D)), per_layer((1, D)),   # w2, b2
        per_layer((1, D)), per_layer((1, D)),   # ln2 gamma / beta
    ]

    out = pl.pallas_call(
        functools.partial(fused_encoder_kernel, nheads=nheads),
        out_shape=jax.ShapeDtypeStruct((Bp, S, D), jnp.float32),
        grid_spec=pltpu.PrefetchScalarGridSpec(
            num_scalar_prefetch=0,
            grid=(BB, L),                       # batch blocks (parallel) x L
            in_specs=in_specs,
            out_specs=out_spec,
            scratch_shapes=[pltpu.VMEM((TB * S, D), jnp.float32)]),
        compiler_params=pltpu.CompilerParams(
            dimension_semantics=("parallel", "arbitrary")),
    )(xb,
      pk["wqkv"], pk["bqkv"], pk["wo"], pk["bo"], pk["ln1g"], pk["ln1b"],
      pk["w1"], pk["b1"], pk["w2"], pk["b2"], pk["ln2g"], pk["ln2b"])

    out = out[:B]
    return jnp.transpose(out, (1, 0, 2))        # back to (S, B, D)


# ----------------------- deterministic parameter init -----------------------
def init_layer_params(key, d_model, d_ff):
    ks = jax.random.split(key, 12)
    s = 0.02
    f32 = jnp.float32

    def nrm(k, shape):
        return (jax.random.normal(k, shape, f32) * s).astype(f32)

    return {
        # attention in-proj (stored transposed: y = x @ W_t + b)
        "wq_t": nrm(ks[0], (d_model, d_model)),
        "wk_t": nrm(ks[1], (d_model, d_model)),
        "wv_t": nrm(ks[2], (d_model, d_model)),
        "bq": nrm(ks[3], (1, d_model)),
        "bk": nrm(ks[4], (1, d_model)),
        "bv": nrm(ks[5], (1, d_model)),
        # attention out-proj
        "wo_t": nrm(ks[6], (d_model, d_model)),
        "bo": nrm(ks[7], (1, d_model)),
        # layer norms
        "ln1_g": jnp.ones((1, d_model), f32),
        "ln1_b": jnp.zeros((1, d_model), f32),
        "ln2_g": jnp.ones((1, d_model), f32),
        "ln2_b": jnp.zeros((1, d_model), f32),
        # feed-forward
        "w1_t": nrm(ks[8], (d_model, d_ff)),
        "b1": nrm(ks[9], (1, d_ff)),
        "w2_t": nrm(ks[10], (d_ff, d_model)),
        "b2": nrm(ks[11], (1, d_model)),
    }


# ---------------------------- pure-JAX reference ----------------------------
def _ln_ref(x, g, b, eps=1e-5):
    mu = x.mean(-1, keepdims=True)
    xc = x - mu
    var = (xc * xc).mean(-1, keepdims=True)
    return xc / jnp.sqrt(var + eps) * g + b


def encoder_layer_ref(xb, p, nheads):
    B, S, D = xb.shape
    hd = D // nheads
    hp = jax.lax.Precision.HIGHEST
    x2 = xb.reshape(B * S, D)
    q = jnp.dot(x2, p["wq_t"], precision=hp) + p["bq"]
    k = jnp.dot(x2, p["wk_t"], precision=hp) + p["bk"]
    v = jnp.dot(x2, p["wv_t"], precision=hp) + p["bv"]
    qh = q.reshape(B, S, nheads, hd).transpose(0, 2, 1, 3)
    kh = k.reshape(B, S, nheads, hd).transpose(0, 2, 1, 3)
    vh = v.reshape(B, S, nheads, hd).transpose(0, 2, 1, 3)
    sc = jnp.einsum("bhsd,bhtd->bhst", qh, kh, precision=hp) / jnp.sqrt(hd)
    pr = jax.nn.softmax(sc, axis=-1)
    ctx = jnp.einsum("bhst,bhtd->bhsd", pr, vh, precision=hp)
    ctx = ctx.transpose(0, 2, 1, 3).reshape(B * S, D)
    ao = jnp.dot(ctx, p["wo_t"], precision=hp) + p["bo"]
    y = _ln_ref(x2 + ao, p["ln1_g"], p["ln1_b"])
    h1 = jnp.maximum(jnp.dot(y, p["w1_t"], precision=hp) + p["b1"], 0.0)
    h2 = jnp.dot(h1, p["w2_t"], precision=hp) + p["b2"]
    z = _ln_ref(y + h2, p["ln2_g"], p["ln2_b"])
    return z.reshape(B, S, D)


if __name__ == "__main__":
    # Small shapes consistent with the module: d_model divisible by nheads=8.
    S, B = 8, 2
    d_model, nheads, num_layers, d_ff = 128, 8, 2, 256

    key = jax.random.PRNGKey(0)
    kx, kp = jax.random.split(key)
    x = jax.random.normal(kx, (S, B, d_model), jnp.float32)   # (seq, batch, d)
    layer_params = [init_layer_params(k, d_model, d_ff)
                    for k in jax.random.split(kp, num_layers)]

    out = cross_sectional_transformer(x, layer_params, nheads, 32)
    out = jax.block_until_ready(out)
    assert out.shape == (S, B, d_model)

    # Cross-check against a pure-JAX (Precision.HIGHEST, f32) reference.
    xb = jnp.transpose(x, (1, 0, 2))
    ref = xb
    for p in layer_params:
        ref = encoder_layer_ref(ref, p, nheads)
    ref = jnp.transpose(ref, (1, 0, 2))
    max_err = float(jnp.max(jnp.abs(out - ref)))
    # Kernel matmuls use bf16 operands (f32 accumulation) and an approx
    # softmax reciprocal, so compare against the f32 reference with a
    # relaxed tolerance.
    if not (max_err < 2e-2):
        raise AssertionError(f"kernel/reference mismatch: max_err={max_err}")

    print("KERNEL_OK")
</pallas_src>

<mosaic_0001>
module attributes {stable_mosaic.version = 11 : i64} {
  func.func @fused_encoder_kernel(%arg0: i32, %arg1: i32, %arg2: memref<2x8x128xf32, #tpu.memory_space<vmem>>, %arg3: memref<1x128x384xbf16, #tpu.memory_space<vmem>>, %arg4: memref<1x1x384xf32, #tpu.memory_space<vmem>>, %arg5: memref<1x128x128xbf16, #tpu.memory_space<vmem>>, %arg6: memref<1x1x128xf32, #tpu.memory_space<vmem>>, %arg7: memref<1x1x128xf32, #tpu.memory_space<vmem>>, %arg8: memref<1x1x128xf32, #tpu.memory_space<vmem>>, %arg9: memref<1x128x256xbf16, #tpu.memory_space<vmem>>, %arg10: memref<1x1x256xf32, #tpu.memory_space<vmem>>, %arg11: memref<1x256x128xbf16, #tpu.memory_space<vmem>>, %arg12: memref<1x1x128xf32, #tpu.memory_space<vmem>>, %arg13: memref<1x1x128xf32, #tpu.memory_space<vmem>>, %arg14: memref<1x1x128xf32, #tpu.memory_space<vmem>>, %arg15: memref<2x8x128xf32, #tpu.memory_space<vmem>>, %arg16: memref<16x128xf32, #tpu.memory_space<vmem>>) attributes {dimension_semantics = [#tpu.dimension_semantics<parallel>, #tpu.dimension_semantics<arbitrary>], iteration_bounds = array<i64: 1, 2>, scalar_prefetch = 0 : i64, scratch_operands = 1 : i64, tpu.core_type = #tpu.core_type<tc>, window_params = [{transform_indices = @transform_0, window_bounds = array<i64: 2, 8, 128>}, {transform_indices = @transform_1, window_bounds = array<i64: 1, 128, 384>}, {transform_indices = @transform_2, window_bounds = array<i64: 1, 1, 384>}, {transform_indices = @transform_3, window_bounds = array<i64: 1, 128, 128>}, {transform_indices = @transform_4, window_bounds = array<i64: 1, 1, 128>}, {transform_indices = @transform_5, window_bounds = array<i64: 1, 1, 128>}, {transform_indices = @transform_6, window_bounds = array<i64: 1, 1, 128>}, {transform_indices = @transform_7, window_bounds = array<i64: 1, 128, 256>}, {transform_indices = @transform_8, window_bounds = array<i64: 1, 1, 256>}, {transform_indices = @transform_9, window_bounds = array<i64: 1, 256, 128>}, {transform_indices = @transform_10, window_bounds = array<i64: 1, 1, 128>}, {transform_indices = @transform_11, window_bounds = array<i64: 1, 1, 128>}, {transform_indices = @transform_12, window_bounds = array<i64: 1, 1, 128>}, {transform_indices = @transform_13, window_bounds = array<i64: 2, 8, 128>}]} {
    %c0_i32 = arith.constant 0 : i32
    %0 = arith.cmpi eq, %arg1, %c0_i32 : i32
    %1 = arith.extui %0 : i1 to i32
    %c0_i32_0 = arith.constant 0 : i32
    %2 = arith.cmpi ne, %1, %c0_i32_0 : i32
    scf.if %2 {
      %c0_99 = arith.constant 0 : index
      %c0_100 = arith.constant 0 : index
      %c0_101 = arith.constant 0 : index
      %261 = vector.load %arg2[%c0_99, %c0_100, %c0_101] : memref<2x8x128xf32, #tpu.memory_space<vmem>>, vector<2x8x128xf32>
      %c0_102 = arith.constant 0 : index
      %c0_103 = arith.constant 0 : index
      %c0_104 = arith.constant 0 : index
      %262 = vector.load %arg15[%c0_102, %c0_103, %c0_104] : memref<2x8x128xf32, #tpu.memory_space<vmem>>, vector<2x8x128xf32>
      tpu.vector_store %arg15[%c0_102, %c0_103, %c0_104], %261 {strides = array<i32>} : memref<2x8x128xf32, #tpu.memory_space<vmem>>, vector<2x8x128xf32>,
    } else {
    }
    %c0 = arith.constant 0 : index
    %c0_1 = arith.constant 0 : index
    %c0_2 = arith.constant 0 : index
    %3 = vector.load %arg15[%c0, %c0_1, %c0_2] : memref<2x8x128xf32, #tpu.memory_space<vmem>>, vector<2x8x128xf32>
    %4 = vector.shape_cast %3 : vector<2x8x128xf32> to vector<16x128xf32>
    %5 = arith.truncf %4 : vector<16x128xf32> to vector<16x128xbf16>
    %c0_3 = arith.constant 0 : index
    %c0_4 = arith.constant 0 : index
    %c0_5 = arith.constant 0 : index
    %6 = vector.load %arg3[%c0_3, %c0_4, %c0_5] : memref<1x128x384xbf16, #tpu.memory_space<vmem>>, vector<1x128x384xbf16>
    %7 = vector.shape_cast %6 : vector<1x128x384xbf16> to vector<128x384xbf16>
    %cst = arith.constant dense<0.000000e+00> : vector<16x384xf32>
    %8 = tpu.matmul %5, %7, %cst {dimension_numbers = #tpu.dot_dimension_numbers<[1], [0], [0], [1], [0, 0, 1, 1], [], []>} : vector<16x128xbf16>, vector<128x384xbf16>, vector<16x384xf32> -> vector<16x384xf32>
    %c0_6 = arith.constant 0 : index
    %c0_7 = arith.constant 0 : index
    %c0_8 = arith.constant 0 : index
    %9 = vector.load %arg4[%c0_6, %c0_7, %c0_8] : memref<1x1x384xf32, #tpu.memory_space<vmem>>, vector<1x1x384xf32>
    %10 = vector.shape_cast %9 : vector<1x1x384xf32> to vector<1x384xf32>
    %11 = vector.broadcast %10 : vector<1x384xf32> to vector<16x384xf32>
    %12 = arith.addf %8, %11 : vector<16x384xf32>
    %13 = arith.truncf %12 : vector<16x384xf32> to vector<16x384xbf16>
    %14 = vector.extract_strided_slice %13 {offsets = [0, 0], sizes = [16, 16], strides = [1, 1]} : vector<16x384xbf16> to vector<16x16xbf16>
    %15 = vector.shape_cast %14 : vector<16x16xbf16> to vector<2x8x16xbf16>
    %16 = vector.extract_strided_slice %13 {offsets = [0, 128], sizes = [16, 16], strides = [1, 1]} : vector<16x384xbf16> to vector<16x16xbf16>
    %17 = vector.shape_cast %16 : vector<16x16xbf16> to vector<2x8x16xbf16>
    %18 = vector.extract_strided_slice %13 {offsets = [0, 256], sizes = [16, 16], strides = [1, 1]} : vector<16x384xbf16> to vector<16x16xbf16>
    %19 = vector.shape_cast %18 : vector<16x16xbf16> to vector<2x8x16xbf16>
    "tpu.trace_start"() <{level = 10 : i32, message = "bqd,bkd->bqk"}> : () -> ()
    %cst_9 = arith.constant dense<0.000000e+00> : vector<2x8x8xf32>
    %20 = tpu.matmul %15, %17, %cst_9 {dimension_numbers = #tpu.dot_dimension_numbers<[2], [2], [1], [1], [0, 0, 0, 1, 1, 1], [0], [0]>} : vector<2x8x16xbf16>, vector<2x8x16xbf16>, vector<2x8x8xf32> -> vector<2x8x8xf32>
    "tpu.trace_stop"() : () -> ()
    %cst_10 = arith.constant dense<0xFF800000> : vector<2x8xf32>
    %21 = vector.multi_reduction <maximumf>, %20, %cst_10 [2] : vector<2x8x8xf32> to vector<2x8xf32>
    %22 = vector.shape_cast %21 : vector<2x8xf32> to vector<2x8x1xf32>
    %23 = vector.broadcast %22 : vector<2x8x1xf32> to vector<2x8x8xf32>
    %24 = arith.subf %20, %23 : vector<2x8x8xf32>
    %25 = math.exp %24 : vector<2x8x8xf32>
    %cst_11 = arith.constant dense<0.000000e+00> : vector<2x8xf32>
    %26 = vector.multi_reduction <add>, %25, %cst_11 [2] : vector<2x8x8xf32> to vector<2x8xf32>
    %27 = vector.shape_cast %26 : vector<2x8xf32> to vector<2x8x1xf32>
    %28 = tpu.reciprocal %27 {approx = true} : vector<2x8x1xf32> -> vector<2x8x1xf32>
    %29 = vector.broadcast %28 : vector<2x8x1xf32> to vector<2x8x8xf32>
    %30 = arith.mulf %25, %29 : vector<2x8x8xf32>
    %31 = arith.truncf %30 : vector<2x8x8xf32> to vector<2x8x8xbf16>
    "tpu.trace_start"() <{level = 10 : i32, message = "bqk,bkd->bqd"}> : () -> ()
    %cst_12 = arith.constant dense<0.000000e+00> : vector<2x8x16xf32>
    %32 = tpu.matmul %31, %19, %cst_12 {dimension_numbers = #tpu.dot_dimension_numbers<[2], [1], [1], [2], [0, 0, 0, 1, 1, 2], [0], [0]>} : vector<2x8x8xbf16>, vector<2x8x16xbf16>, vector<2x8x16xf32> -> vector<2x8x16xf32>
    "tpu.trace_stop"() : () -> ()
    %33 = vector.shape_cast %32 : vector<2x8x16xf32> to vector<16x16xf32>
    %c0_13 = arith.constant 0 : index
    %c0_14 = arith.constant 0 : index
    %34 = vector.load %arg16[%c0_13, %c0_14] : memref<16x128xf32, #tpu.memory_space<vmem>>, vector<16x16xf32>
    tpu.vector_store %arg16[%c0_13, %c0_14], %33 {strides = array<i32>} : memref<16x128xf32, #tpu.memory_space<vmem>>, vector<16x16xf32>,
    %35 = vector.extract_strided_slice %13 {offsets = [0, 16], sizes = [16, 16], strides = [1, 1]} : vector<16x384xbf16> to vector<16x16xbf16>
    %36 = vector.shape_cast %35 : vector<16x16xbf16> to vector<2x8x16xbf16>
    %37 = vector.extract_strided_slice %13 {offsets = [0, 144], sizes = [16, 16], strides = [1, 1]} : vector<16x384xbf16> to vector<16x16xbf16>
    %38 = vector.shape_cast %37 : vector<16x16xbf16> to vector<2x8x16xbf16>
    %39 = vector.extract_strided_slice %13 {offsets = [0, 272], sizes = [16, 16], strides = [1, 1]} : vector<16x384xbf16> to vector<16x16xbf16>
    %40 = vector.shape_cast %39 : vector<16x16xbf16> to vector<2x8x16xbf16>
    "tpu.trace_start"() <{level = 10 : i32, message = "bqd,bkd->bqk"}> : () -> ()
    %cst_15 = arith.constant dense<0.000000e+00> : vector<2x8x8xf32>
    %41 = tpu.matmul %36, %38, %cst_15 {dimension_numbers = #tpu.dot_dimension_numbers<[2], [2], [1], [1], [0, 0, 0, 1, 1, 1], [0], [0]>} : vector<2x8x16xbf16>, vector<2x8x16xbf16>, vector<2x8x8xf32> -> vector<2x8x8xf32>
    "tpu.trace_stop"() : () -> ()
    %cst_16 = arith.constant dense<0xFF800000> : vector<2x8xf32>
    %42 = vector.multi_reduction <maximumf>, %41, %cst_16 [2] : vector<2x8x8xf32> to vector<2x8xf32>
    %43 = vector.shape_cast %42 : vector<2x8xf32> to vector<2x8x1xf32>
    %44 = vector.broadcast %43 : vector<2x8x1xf32> to vector<2x8x8xf32>
    %45 = arith.subf %41, %44 : vector<2x8x8xf32>
    %46 = math.exp %45 : vector<2x8x8xf32>
    %cst_17 = arith.constant dense<0.000000e+00> : vector<2x8xf32>
    %47 = vector.multi_reduction <add>, %46, %cst_17 [2] : vector<2x8x8xf32> to vector<2x8xf32>
    %48 = vector.shape_cast %47 : vector<2x8xf32> to vector<2x8x1xf32>
    %49 = tpu.reciprocal %48 {approx = true} : vector<2x8x1xf32> -> vector<2x8x1xf32>
    %50 = vector.broadcast %49 : vector<2x8x1xf32> to vector<2x8x8xf32>
    %51 = arith.mulf %46, %50 : vector<2x8x8xf32>
    %52 = arith.truncf %51 : vector<2x8x8xf32> to vector<2x8x8xbf16>
    "tpu.trace_start"() <{level = 10 : i32, message = "bqk,bkd->bqd"}> : () -> ()
    %cst_18 = arith.constant dense<0.000000e+00> : vector<2x8x16xf32>
    %53 = tpu.matmul %52, %40, %cst_18 {dimension_numbers = #tpu.dot_dimension_numbers<[2], [1], [1], [2], [0, 0, 0, 1, 1, 2], [0], [0]>} : vector<2x8x8xbf16>, vector<2x8x16xbf16>, vector<2x8x16xf32> -> vector<2x8x16xf32>
    "tpu.trace_stop"() : () -> ()
    %54 = vector.shape_cast %53 : vector<2x8x16xf32> to vector<16x16xf32>
    %c0_19 = arith.constant 0 : index
    %c16 = arith.constant 16 : index
    %55 = vector.load %arg16[%c0_19, %c16] : memref<16x128xf32, #tpu.memory_space<vmem>>, vector<16x16xf32>
    tpu.vector_store %arg16[%c0_19, %c16], %54 {strides = array<i32>} : memref<16x128xf32, #tpu.memory_space<vmem>>, vector<16x16xf32>,
    %56 = vector.extract_strided_slice %13 {offsets = [0, 32], sizes = [16, 16], strides = [1, 1]} : vector<16x384xbf16> to vector<16x16xbf16>
    %57 = vector.shape_cast %56 : vector<16x16xbf16> to vector<2x8x16xbf16>
    %58 = vector.extract_strided_slice %13 {offsets = [0, 160], sizes = [16, 16], strides = [1, 1]} : vector<16x384xbf16> to vector<16x16xbf16>
    %59 = vector.shape_cast %58 : vector<16x16xbf16> to vector<2x8x16xbf16>
    %60 = vector.extract_strided_slice %13 {offsets = [0, 288], sizes = [16, 16], strides = [1, 1]} : vector<16x384xbf16> to vector<16x16xbf16>
    %61 = vector.shape_cast %60 : vector<16x16xbf16> to vector<2x8x16xbf16>
    "tpu.trace_start"() <{level = 10 : i32, message = "bqd,bkd->bqk"}> : () -> ()
    %cst_20 = arith.constant dense<0.000000e+00> : vector<2x8x8xf32>
    %62 = tpu.matmul %57, %59, %cst_20 {dimension_numbers = #tpu.dot_dimension_numbers<[2], [2], [1], [1], [0, 0, 0, 1, 1, 1], [0], [0]>} : vector<2x8x16xbf16>, vector<2x8x16xbf16>, vector<2x8x8xf32> -> vector<2x8x8xf32>
    "tpu.trace_stop"() : () -> ()
    %cst_21 = arith.constant dense<0xFF800000> : vector<2x8xf32>
    %63 = vector.multi_reduction <maximumf>, %62, %cst_21 [2] : vector<2x8x8xf32> to vector<2x8xf32>
    %64 = vector.shape_cast %63 : vector<2x8xf32> to vector<2x8x1xf32>
    %65 = vector.broadcast %64 : vector<2x8x1xf32> to vector<2x8x8xf32>
    %66 = arith.subf %62, %65 : vector<2x8x8xf32>
    %67 = math.exp %66 : vector<2x8x8xf32>
    %cst_22 = arith.constant dense<0.000000e+00> : vector<2x8xf32>
    %68 = vector.multi_reduction <add>, %67, %cst_22 [2] : vector<2x8x8xf32> to vector<2x8xf32>
    %69 = vector.shape_cast %68 : vector<2x8xf32> to vector<2x8x1xf32>
    %70 = tpu.reciprocal %69 {approx = true} : vector<2x8x1xf32> -> vector<2x8x1xf32>
    %71 = vector.broadcast %70 : vector<2x8x1xf32> to vector<2x8x8xf32>
    %72 = arith.mulf %67, %71 : vector<2x8x8xf32>
    %73 = arith.truncf %72 : vector<2x8x8xf32> to vector<2x8x8xbf16>
    "tpu.trace_start"() <{level = 10 : i32, message = "bqk,bkd->bqd"}> : () -> ()
    %cst_23 = arith.constant dense<0.000000e+00> : vector<2x8x16xf32>
    %74 = tpu.matmul %73, %61, %cst_23 {dimension_numbers = #tpu.dot_dimension_numbers<[2], [1], [1], [2], [0, 0, 0, 1, 1, 2], [0], [0]>} : vector<2x8x8xbf16>, vector<2x8x16xbf16>, vector<2x8x16xf32> -> vector<2x8x16xf32>
    "tpu.trace_stop"() : () -> ()
    %75 = vector.shape_cast %74 : vector<2x8x16xf32> to vector<16x16xf32>
    %c0_24 = arith.constant 0 : index
    %c32 = arith.constant 32 : index
    %76 = vector.load %arg16[%c0_24, %c32] : memref<16x128xf32, #tpu.memory_space<vmem>>, vector<16x16xf32>
    tpu.vector_store %arg16[%c0_24, %c32], %75 {strides = array<i32>} : memref<16x128xf32, #tpu.memory_space<vmem>>, vector<16x16xf32>,
    %77 = vector.extract_strided_slice %13 {offsets = [0, 48], sizes = [16, 16], strides = [1, 1]} : vector<16x384xbf16> to vector<16x16xbf16>
    %78 = vector.shape_cast %77 : vector<16x16xbf16> to vector<2x8x16xbf16>
    %79 = vector.extract_strided_slice %13 {offsets = [0, 176], sizes = [16, 16], strides = [1, 1]} : vector<16x384xbf16> to vector<16x16xbf16>
    %80 = vector.shape_cast %79 : vector<16x16xbf16> to vector<2x8x16xbf16>
    %81 = vector.extract_strided_slice %13 {offsets = [0, 304], sizes = [16, 16], strides = [1, 1]} : vector<16x384xbf16> to vector<16x16xbf16>
    %82 = vector.shape_cast %81 : vector<16x16xbf16> to vector<2x8x16xbf16>
    "tpu.trace_start"() <{level = 10 : i32, message = "bqd,bkd->bqk"}> : () -> ()
    %cst_25 = arith.constant dense<0.000000e+00> : vector<2x8x8xf32>
    %83 = tpu.matmul %78, %80, %cst_25 {dimension_numbers = #tpu.dot_dimension_numbers<[2], [2], [1], [1], [0, 0, 0, 1, 1, 1], [0], [0]>} : vector<2x8x16xbf16>, vector<2x8x16xbf16>, vector<2x8x8xf32> -> vector<2x8x8xf32>
    "tpu.trace_stop"() : () -> ()
    %cst_26 = arith.constant dense<0xFF800000> : vector<2x8xf32>
    %84 = vector.multi_reduction <maximumf>, %83, %cst_26 [2] : vector<2x8x8xf32> to vector<2x8xf32>
    %85 = vector.shape_cast %84 : vector<2x8xf32> to vector<2x8x1xf32>
    %86 = vector.broadcast %85 : vector<2x8x1xf32> to vector<2x8x8xf32>
    %87 = arith.subf %83, %86 : vector<2x8x8xf32>
    %88 = math.exp %87 : vector<2x8x8xf32>
    %cst_27 = arith.constant dense<0.000000e+00> : vector<2x8xf32>
    %89 = vector.multi_reduction <add>, %88, %cst_27 [2] : vector<2x8x8xf32> to vector<2x8xf32>
    %90 = vector.shape_cast %89 : vector<2x8xf32> to vector<2x8x1xf32>
    %91 = tpu.reciprocal %90 {approx = true} : vector<2x8x1xf32> -> vector<2x8x1xf32>
    %92 = vector.broadcast %91 : vector<2x8x1xf32> to vector<2x8x8xf32>
    %93 = arith.mulf %88, %92 : vector<2x8x8xf32>
    %94 = arith.truncf %93 : vector<2x8x8xf32> to vector<2x8x8xbf16>
    "tpu.trace_start"() <{level = 10 : i32, message = "bqk,bkd->bqd"}> : () -> ()
    %cst_28 = arith.constant dense<0.000000e+00> : vector<2x8x16xf32>
    %95 = tpu.matmul %94, %82, %cst_28 {dimension_numbers = #tpu.dot_dimension_numbers<[2], [1], [1], [2], [0, 0, 0, 1, 1, 2], [0], [0]>} : vector<2x8x8xbf16>, vector<2x8x16xbf16>, vector<2x8x16xf32> -> vector<2x8x16xf32>
    "tpu.trace_stop"() : () -> ()
    %96 = vector.shape_cast %95 : vector<2x8x16xf32> to vector<16x16xf32>
    %c0_29 = arith.constant 0 : index
    %c48 = arith.constant 48 : index
    %97 = vector.load %arg16[%c0_29, %c48] : memref<16x128xf32, #tpu.memory_space<vmem>>, vector<16x16xf32>
    tpu.vector_store %arg16[%c0_29, %c48], %96 {strides = array<i32>} : memref<16x128xf32, #tpu.memory_space<vmem>>, vector<16x16xf32>,
    %98 = vector.extract_strided_slice %13 {offsets = [0, 64], sizes = [16, 16], strides = [1, 1]} : vector<16x384xbf16> to vector<16x16xbf16>
    %99 = vector.shape_cast %98 : vector<16x16xbf16> to vector<2x8x16xbf16>
    %100 = vector.extract_strided_slice %13 {offsets = [0, 192], sizes = [16, 16], strides = [1, 1]} : vector<16x384xbf16> to vector<16x16xbf16>
    %101 = vector.shape_cast %100 : vector<16x16xbf16> to vector<2x8x16xbf16>
    %102 = vector.extract_strided_slice %13 {offsets = [0, 320], sizes = [16, 16], strides = [1, 1]} : vector<16x384xbf16> to vector<16x16xbf16>
    %103 = vector.shape_cast %102 : vector<16x16xbf16> to vector<2x8x16xbf16>
    "tpu.trace_start"() <{level = 10 : i32, message = "bqd,bkd->bqk"}> : () -> ()
    %cst_30 = arith.constant dense<0.000000e+00> : vector<2x8x8xf32>
    %104 = tpu.matmul %99, %101, %cst_30 {dimension_numbers = #tpu.dot_dimension_numbers<[2], [2], [1], [1], [0, 0, 0, 1, 1, 1], [0], [0]>} : vector<2x8x16xbf16>, vector<2x8x16xbf16>, vector<2x8x8xf32> -> vector<2x8x8xf32>
    "tpu.trace_stop"() : () -> ()
    %cst_31 = arith.constant dense<0xFF800000> : vector<2x8xf32>
    %105 = vector.multi_reduction <maximumf>, %104, %cst_31 [2] : vector<2x8x8xf32> to vector<2x8xf32>
    %106 = vector.shape_cast %105 : vector<2x8xf32> to vector<2x8x1xf32>
    %107 = vector.broadcast %106 : vector<2x8x1xf32> to vector<2x8x8xf32>
    %108 = arith.subf %104, %107 : vector<2x8x8xf32>
    %109 = math.exp %108 : vector<2x8x8xf32>
    %cst_32 = arith.constant dense<0.000000e+00> : vector<2x8xf32>
    %110 = vector.multi_reduction <add>, %109, %cst_32 [2] : vector<2x8x8xf32> to vector<2x8xf32>
    %111 = vector.shape_cast %110 : vector<2x8xf32> to vector<2x8x1xf32>
    %112 = tpu.reciprocal %111 {approx = true} : vector<2x8x1xf32> -> vector<2x8x1xf32>
    %113 = vector.broadcast %112 : vector<2x8x1xf32> to vector<2x8x8xf32>
    %114 = arith.mulf %109, %113 : vector<2x8x8xf32>
    %115 = arith.truncf %114 : vector<2x8x8xf32> to vector<2x8x8xbf16>
    "tpu.trace_start"() <{level = 10 : i32, message = "bqk,bkd->bqd"}> : () -> ()
    %cst_33 = arith.constant dense<0.000000e+00> : vector<2x8x16xf32>
    %116 = tpu.matmul %115, %103, %cst_33 {dimension_numbers = #tpu.dot_dimension_numbers<[2], [1], [1], [2], [0, 0, 0, 1, 1, 2], [0], [0]>} : vector<2x8x8xbf16>, vector<2x8x16xbf16>, vector<2x8x16xf32> -> vector<2x8x16xf32>
    "tpu.trace_stop"() : () -> ()
    %117 = vector.shape_cast %116 : vector<2x8x16xf32> to vector<16x16xf32>
    %c0_34 = arith.constant 0 : index
    %c64 = arith.constant 64 : index
    %118 = vector.load %arg16[%c0_34, %c64] : memref<16x128xf32, #tpu.memory_space<vmem>>, vector<16x16xf32>
    tpu.vector_store %arg16[%c0_34, %c64], %117 {strides = array<i32>} : memref<16x128xf32, #tpu.memory_space<vmem>>, vector<16x16xf32>,
    %119 = vector.extract_strided_slice %13 {offsets = [0, 80], sizes = [16, 16], strides = [1, 1]} : vector<16x384xbf16> to vector<16x16xbf16>
    %120 = vector.shape_cast %119 : vector<16x16xbf16> to vector<2x8x16xbf16>
    %121 = vector.extract_strided_slice %13 {offsets = [0, 208], sizes = [16, 16], strides = [1, 1]} : vector<16x384xbf16> to vector<16x16xbf16>
    %122 = vector.shape_cast %121 : vector<16x16xbf16> to vector<2x8x16xbf16>
    %123 = vector.extract_strided_slice %13 {offsets = [0, 336], sizes = [16, 16], strides = [1, 1]} : vector<16x384xbf16> to vector<16x16xbf16>
    %124 = vector.shape_cast %123 : vector<16x16xbf16> to vector<2x8x16xbf16>
    "tpu.trace_start"() <{level = 10 : i32, message = "bqd,bkd->bqk"}> : () -> ()
    %cst_35 = arith.constant dense<0.000000e+00> : vector<2x8x8xf32>
    %125 = tpu.matmul %120, %122, %cst_35 {dimension_numbers = #tpu.dot_dimension_numbers<[2], [2], [1], [1], [0, 0, 0, 1, 1, 1], [0], [0]>} : vector<2x8x16xbf16>, vector<2x8x16xbf16>, vector<2x8x8xf32> -> vector<2x8x8xf32>
    "tpu.trace_stop"() : () -> ()
    %cst_36 = arith.constant dense<0xFF800000> : vector<2x8xf32>
    %126 = vector.multi_reduction <maximumf>, %125, %cst_36 [2] : vector<2x8x8xf32> to vector<2x8xf32>
    %127 = vector.shape_cast %126 : vector<2x8xf32> to vector<2x8x1xf32>
    %128 = vector.broadcast %127 : vector<2x8x1xf32> to vector<2x8x8xf32>
    %129 = arith.subf %125, %128 : vector<2x8x8xf32>
    %130 = math.exp %129 : vector<2x8x8xf32>
    %cst_37 = arith.constant dense<0.000000e+00> : vector<2x8xf32>
    %131 = vector.multi_reduction <add>, %130, %cst_37 [2] : vector<2x8x8xf32> to vector<2x8xf32>
    %132 = vector.shape_cast %131 : vector<2x8xf32> to vector<2x8x1xf32>
    %133 = tpu.reciprocal %132 {approx = true} : vector<2x8x1xf32> -> vector<2x8x1xf32>
    %134 = vector.broadcast %133 : vector<2x8x1xf32> to vector<2x8x8xf32>
    %135 = arith.mulf %130, %134 : vector<2x8x8xf32>
    %136 = arith.truncf %135 : vector<2x8x8xf32> to vector<2x8x8xbf16>
    "tpu.trace_start"() <{level = 10 : i32, message = "bqk,bkd->bqd"}> : () -> ()
    %cst_38 = arith.constant dense<0.000000e+00> : vector<2x8x16xf32>
    %137 = tpu.matmul %136, %124, %cst_38 {dimension_numbers = #tpu.dot_dimension_numbers<[2], [1], [1], [2], [0, 0, 0, 1, 1, 2], [0], [0]>} : vector<2x8x8xbf16>, vector<2x8x16xbf16>, vector<2x8x16xf32> -> vector<2x8x16xf32>
    "tpu.trace_stop"() : () -> ()
    %138 = vector.shape_cast %137 : vector<2x8x16xf32> to vector<16x16xf32>
    %c0_39 = arith.constant 0 : index
    %c80 = arith.constant 80 : index
    %139 = vector.load %arg16[%c0_39, %c80] : memref<16x128xf32, #tpu.memory_space<vmem>>, vector<16x16xf32>
    tpu.vector_store %arg16[%c0_39, %c80], %138 {strides = array<i32>} : memref<16x128xf32, #tpu.memory_space<vmem>>, vector<16x16xf32>,
    %140 = vector.extract_strided_slice %13 {offsets = [0, 96], sizes = [16, 16], strides = [1, 1]} : vector<16x384xbf16> to vector<16x16xbf16>
    %141 = vector.shape_cast %140 : vector<16x16xbf16> to vector<2x8x16xbf16>
    %142 = vector.extract_strided_slice %13 {offsets = [0, 224], sizes = [16, 16], strides = [1, 1]} : vector<16x384xbf16> to vector<16x16xbf16>
    %143 = vector.shape_cast %142 : vector<16x16xbf16> to vector<2x8x16xbf16>
    %144 = vector.extract_strided_slice %13 {offsets = [0, 352], sizes = [16, 16], strides = [1, 1]} : vector<16x384xbf16> to vector<16x16xbf16>
    %145 = vector.shape_cast %144 : vector<16x16xbf16> to vector<2x8x16xbf16>
    "tpu.trace_start"() <{level = 10 : i32, message = "bqd,bkd->bqk"}> : () -> ()
    %cst_40 = arith.constant dense<0.000000e+00> : vector<2x8x8xf32>
    %146 = tpu.matmul %141, %143, %cst_40 {dimension_numbers = #tpu.dot_dimension_numbers<[2], [2], [1], [1], [0, 0, 0, 1, 1, 1], [0], [0]>} : vector<2x8x16xbf16>, vector<2x8x16xbf16>, vector<2x8x8xf32> -> vector<2x8x8xf32>
    "tpu.trace_stop"() : () -> ()
    %cst_41 = arith.constant dense<0xFF800000> : vector<2x8xf32>
    %147 = vector.multi_reduction <maximumf>, %146, %cst_41 [2] : vector<2x8x8xf32> to vector<2x8xf32>
    %148 = vector.shape_cast %147 : vector<2x8xf32> to vector<2x8x1xf32>
    %149 = vector.broadcast %148 : vector<2x8x1xf32> to vector<2x8x8xf32>
    %150 = arith.subf %146, %149 : vector<2x8x8xf32>
    %151 = math.exp %150 : vector<2x8x8xf32>
    %cst_42 = arith.constant dense<0.000000e+00> : vector<2x8xf32>
    %152 = vector.multi_reduction <add>, %151, %cst_42 [2] : vector<2x8x8xf32> to vector<2x8xf32>
    %153 = vector.shape_cast %152 : vector<2x8xf32> to vector<2x8x1xf32>
    %154 = tpu.reciprocal %153 {approx = true} : vector<2x8x1xf32> -> vector<2x8x1xf32>
    %155 = vector.broadcast %154 : vector<2x8x1xf32> to vector<2x8x8xf32>
    %156 = arith.mulf %151, %155 : vector<2x8x8xf32>
    %157 = arith.truncf %156 : vector<2x8x8xf32> to vector<2x8x8xbf16>
    "tpu.trace_start"() <{level = 10 : i32, message = "bqk,bkd->bqd"}> : () -> ()
    %cst_43 = arith.constant dense<0.000000e+00> : vector<2x8x16xf32>
    %158 = tpu.matmul %157, %145, %cst_43 {dimension_numbers = #tpu.dot_dimension_numbers<[2], [1], [1], [2], [0, 0, 0, 1, 1, 2], [0], [0]>} : vector<2x8x8xbf16>, vector<2x8x16xbf16>, vector<2x8x16xf32> -> vector<2x8x16xf32>
    "tpu.trace_stop"() : () -> ()
    %159 = vector.shape_cast %158 : vector<2x8x16xf32> to vector<16x16xf32>
    %c0_44 = arith.constant 0 : index
    %c96 = arith.constant 96 : index
    %160 = vector.load %arg16[%c0_44, %c96] : memref<16x128xf32, #tpu.memory_space<vmem>>, vector<16x16xf32>
    tpu.vector_store %arg16[%c0_44, %c96], %159 {strides = array<i32>} : memref<16x128xf32, #tpu.memory_space<vmem>>, vector<16x16xf32>,
    %161 = vector.extract_strided_slice %13 {offsets = [0, 112], sizes = [16, 16], strides = [1, 1]} : vector<16x384xbf16> to vector<16x16xbf16>
    %162 = vector.shape_cast %161 : vector<16x16xbf16> to vector<2x8x16xbf16>
    %163 = vector.extract_strided_slice %13 {offsets = [0, 240], sizes = [16, 16], strides = [1, 1]} : vector<16x384xbf16> to vector<16x16xbf16>
    %164 = vector.shape_cast %163 : vector<16x16xbf16> to vector<2x8x16xbf16>
    %165 = vector.extract_strided_slice %13 {offsets = [0, 368], sizes = [16, 16], strides = [1, 1]} : vector<16x384xbf16> to vector<16x16xbf16>
    %166 = vector.shape_cast %165 : vector<16x16xbf16> to vector<2x8x16xbf16>
    "tpu.trace_start"() <{level = 10 : i32, message = "bqd,bkd->bqk"}> : () -> ()
    %cst_45 = arith.constant dense<0.000000e+00> : vector<2x8x8xf32>
    %167 = tpu.matmul %162, %164, %cst_45 {dimension_numbers = #tpu.dot_dimension_numbers<[2], [2], [1], [1], [0, 0, 0, 1, 1, 1], [0], [0]>} : vector<2x8x16xbf16>, vector<2x8x16xbf16>, vector<2x8x8xf32> -> vector<2x8x8xf32>
    "tpu.trace_stop"() : () -> ()
    %cst_46 = arith.constant dense<0xFF800000> : vector<2x8xf32>
    %168 = vector.multi_reduction <maximumf>, %167, %cst_46 [2] : vector<2x8x8xf32> to vector<2x8xf32>
    %169 = vector.shape_cast %168 : vector<2x8xf32> to vector<2x8x1xf32>
    %170 = vector.broadcast %169 : vector<2x8x1xf32> to vector<2x8x8xf32>
    %171 = arith.subf %167, %170 : vector<2x8x8xf32>
    %172 = math.exp %171 : vector<2x8x8xf32>
    %cst_47 = arith.constant dense<0.000000e+00> : vector<2x8xf32>
    %173 = vector.multi_reduction <add>, %172, %cst_47 [2] : vector<2x8x8xf32> to vector<2x8xf32>
    %174 = vector.shape_cast %173 : vector<2x8xf32> to vector<2x8x1xf32>
    %175 = tpu.reciprocal %174 {approx = true} : vector<2x8x1xf32> -> vector<2x8x1xf32>
    %176 = vector.broadcast %175 : vector<2x8x1xf32> to vector<2x8x8xf32>
    %177 = arith.mulf %172, %176 : vector<2x8x8xf32>
    %178 = arith.truncf %177 : vector<2x8x8xf32> to vector<2x8x8xbf16>
    "tpu.trace_start"() <{level = 10 : i32, message = "bqk,bkd->bqd"}> : () -> ()
    %cst_48 = arith.constant dense<0.000000e+00> : vector<2x8x16xf32>
    %179 = tpu.matmul %178, %166, %cst_48 {dimension_numbers = #tpu.dot_dimension_numbers<[2], [1], [1], [2], [0, 0, 0, 1, 1, 2], [0], [0]>} : vector<2x8x8xbf16>, vector<2x8x16xbf16>, vector<2x8x16xf32> -> vector<2x8x16xf32>
    "tpu.trace_stop"() : () -> ()
    %180 = vector.shape_cast %179 : vector<2x8x16xf32> to vector<16x16xf32>
    %c0_49 = arith.constant 0 : index
    %c112 = arith.constant 112 : index
    %181 = vector.load %arg16[%c0_49, %c112] : memref<16x128xf32, #tpu.memory_space<vmem>>, vector<16x16xf32>
    tpu.vector_store %arg16[%c0_49, %c112], %180 {strides = array<i32>} : memref<16x128xf32, #tpu.memory_space<vmem>>, vector<16x16xf32>,
    %c0_50 = arith.constant 0 : index
    %c0_51 = arith.constant 0 : index
    %182 = vector.load %arg16[%c0_50, %c0_51] : memref<16x128xf32, #tpu.memory_space<vmem>>, vector<16x128xf32>
    %183 = arith.truncf %182 : vector<16x128xf32> to vector<16x128xbf16>
    %c0_52 = arith.constant 0 : index
    %c0_53 = arith.constant 0 : index
    %c0_54 = arith.constant 0 : index
    %184 = vector.load %arg5[%c0_52, %c0_53, %c0_54] : memref<1x128x128xbf16, #tpu.memory_space<vmem>>, vector<1x128x128xbf16>
    %185 = vector.shape_cast %184 : vector<1x128x128xbf16> to vector<128x128xbf16>
    %cst_55 = arith.constant dense<0.000000e+00> : vector<16x128xf32>
    %186 = tpu.matmul %183, %185, %cst_55 {dimension_numbers = #tpu.dot_dimension_numbers<[1], [0], [0], [1], [0, 0, 1, 1], [], []>} : vector<16x128xbf16>, vector<128x128xbf16>, vector<16x128xf32> -> vector<16x128xf32>
    %c0_56 = arith.constant 0 : index
    %c0_57 = arith.constant 0 : index
    %c0_58 = arith.constant 0 : index
    %187 = vector.load %arg6[%c0_56, %c0_57, %c0_58] : memref<1x1x128xf32, #tpu.memory_space<vmem>>, vector<1x1x128xf32>
    %188 = vector.shape_cast %187 : vector<1x1x128xf32> to vector<1x128xf32>
    %189 = vector.broadcast %188 : vector<1x128xf32> to vector<16x128xf32>
    %190 = arith.addf %186, %189 : vector<16x128xf32>
    %191 = arith.addf %4, %190 : vector<16x128xf32>
    %c0_59 = arith.constant 0 : index
    %c0_60 = arith.constant 0 : index
    %c0_61 = arith.constant 0 : index
    %192 = vector.load %arg7[%c0_59, %c0_60, %c0_61] : memref<1x1x128xf32, #tpu.memory_space<vmem>>, vector<1x1x128xf32>
    %193 = vector.shape_cast %192 : vector<1x1x128xf32> to vector<1x128xf32>
    %c0_62 = arith.constant 0 : index
    %c0_63 = arith.constant 0 : index
    %c0_64 = arith.constant 0 : index
    %194 = vector.load %arg8[%c0_62, %c0_63, %c0_64] : memref<1x1x128xf32, #tpu.memory_space<vmem>>, vector<1x1x128xf32>
    %195 = vector.shape_cast %194 : vector<1x1x128xf32> to vector<1x128xf32>
    %cst_65 = arith.constant dense<0.000000e+00> : vector<16xf32>
    %196 = vector.multi_reduction <add>, %191, %cst_65 [1] : vector<16x128xf32> to vector<16xf32>
    %197 = vector.shape_cast %196 : vector<16xf32> to vector<16x1xf32>
    %cst_66 = arith.constant 1.280000e+02 : f32
    %198 = vector.broadcast %cst_66 : f32 to vector<16x1xf32>
    %199 = arith.divf %197, %198 : vector<16x1xf32>
    %200 = vector.broadcast %199 : vector<16x1xf32> to vector<16x128xf32>
    %201 = arith.subf %191, %200 : vector<16x128xf32>
    %202 = arith.mulf %201, %201 : vector<16x128xf32>
    %cst_67 = arith.constant dense<0.000000e+00> : vector<16xf32>
    %203 = vector.multi_reduction <add>, %202, %cst_67 [1] : vector<16x128xf32> to vector<16xf32>
    %204 = vector.shape_cast %203 : vector<16xf32> to vector<16x1xf32>
    %cst_68 = arith.constant 1.280000e+02 : f32
    %205 = vector.broadcast %cst_68 : f32 to vector<16x1xf32>
    %206 = arith.divf %204, %205 : vector<16x1xf32>
    %cst_69 = arith.constant 9.99999974E-6 : f32
    %207 = vector.broadcast %cst_69 : f32 to vector<16x1xf32>
    %208 = arith.addf %206, %207 : vector<16x1xf32>
    %209 = math.rsqrt %208 : vector<16x1xf32>
    %210 = vector.broadcast %209 : vector<16x1xf32> to vector<16x128xf32>
    %211 = arith.mulf %201, %210 : vector<16x128xf32>
    %212 = vector.broadcast %193 : vector<1x128xf32> to vector<16x128xf32>
    %213 = arith.mulf %211, %212 : vector<16x128xf32>
    %214 = vector.broadcast %195 : vector<1x128xf32> to vector<16x128xf32>
    %215 = arith.addf %213, %214 : vector<16x128xf32>
    %216 = arith.truncf %215 : vector<16x128xf32> to vector<16x128xbf16>
    %c0_70 = arith.constant 0 : index
    %c0_71 = arith.constant 0 : index
    %c0_72 = arith.constant 0 : index
    %217 = vector.load %arg9[%c0_70, %c0_71, %c0_72] : memref<1x128x256xbf16, #tpu.memory_space<vmem>>, vector<1x128x256xbf16>
    %218 = vector.shape_cast %217 : vector<1x128x256xbf16> to vector<128x256xbf16>
    %cst_73 = arith.constant dense<0.000000e+00> : vector<16x256xf32>
    %219 = tpu.matmul %216, %218, %cst_73 {dimension_numbers = #tpu.dot_dimension_numbers<[1], [0], [0], [1], [0, 0, 1, 1], [], []>} : vector<16x128xbf16>, vector<128x256xbf16>, vector<16x256xf32> -> vector<16x256xf32>
    %c0_74 = arith.constant 0 : index
    %c0_75 = arith.constant 0 : index
    %c0_76 = arith.constant 0 : index
    %220 = vector.load %arg10[%c0_74, %c0_75, %c0_76] : memref<1x1x256xf32, #tpu.memory_space<vmem>>, vector<1x1x256xf32>
    %221 = vector.shape_cast %220 : vector<1x1x256xf32> to vector<1x256xf32>
    %222 = vector.broadcast %221 : vector<1x256xf32> to vector<16x256xf32>
    %223 = arith.addf %219, %222 : vector<16x256xf32>
    %cst_77 = arith.constant 0.000000e+00 : f32
    %224 = vector.broadcast %cst_77 : f32 to vector<16x256xf32>
    %225 = arith.maximumf %223, %224 : vector<16x256xf32>
    %226 = arith.truncf %225 : vector<16x256xf32> to vector<16x256xbf16>
    %c0_78 = arith.constant 0 : index
    %c0_79 = arith.constant 0 : index
    %c0_80 = arith.constant 0 : index
    %227 = vector.load %arg11[%c0_78, %c0_79, %c0_80] : memref<1x256x128xbf16, #tpu.memory_space<vmem>>, vector<1x256x128xbf16>
    %228 = vector.shape_cast %227 : vector<1x256x128xbf16> to vector<256x128xbf16>
    %cst_81 = arith.constant dense<0.000000e+00> : vector<16x128xf32>
    %229 = tpu.matmul %226, %228, %cst_81 {dimension_numbers = #tpu.dot_dimension_numbers<[1], [0], [0], [1], [0, 0, 1, 1], [], []>} : vector<16x256xbf16>, vector<256x128xbf16>, vector<16x128xf32> -> vector<16x128xf32>
    %c0_82 = arith.constant 0 : index
    %c0_83 = arith.constant 0 : index
    %c0_84 = arith.constant 0 : index
    %230 = vector.load %arg12[%c0_82, %c0_83, %c0_84] : memref<1x1x128xf32, #tpu.memory_space<vmem>>, vector<1x1x128xf32>
    %231 = vector.shape_cast %230 : vector<1x1x128xf32> to vector<1x128xf32>
    %232 = vector.broadcast %231 : vector<1x128xf32> to vector<16x128xf32>
    %233 = arith.addf %229, %232 : vector<16x128xf32>
    %234 = arith.addf %215, %233 : vector<16x128xf32>
    %c0_85 = arith.constant 0 : index
    %c0_86 = arith.constant 0 : index
    %c0_87 = arith.constant 0 : index
    %235 = vector.load %arg13[%c0_85, %c0_86, %c0_87] : memref<1x1x128xf32, #tpu.memory_space<vmem>>, vector<1x1x128xf32>
    %236 = vector.shape_cast %235 : vector<1x1x128xf32> to vector<1x128xf32>
    %c0_88 = arith.constant 0 : index
    %c0_89 = arith.constant 0 : index
    %c0_90 = arith.constant 0 : index
    %237 = vector.load %arg14[%c0_88, %c0_89, %c0_90] : memref<1x1x128xf32, #tpu.memory_space<vmem>>, vector<1x1x128xf32>
    %238 = vector.shape_cast %237 : vector<1x1x128xf32> to vector<1x128xf32>
    %cst_91 = arith.constant dense<0.000000e+00> : vector<16xf32>
    %239 = vector.multi_reduction <add>, %234, %cst_91 [1] : vector<16x128xf32> to vector<16xf32>
    %240 = vector.shape_cast %239 : vector<16xf32> to vector<16x1xf32>
    %cst_92 = arith.constant 1.280000e+02 : f32
    %241 = vector.broadcast %cst_92 : f32 to vector<16x1xf32>
    %242 = arith.divf %240, %241 : vector<16x1xf32>
    %243 = vector.broadcast %242 : vector<16x1xf32> to vector<16x128xf32>
    %244 = arith.subf %234, %243 : vector<16x128xf32>
    %245 = arith.mulf %244, %244 : vector<16x128xf32>
    %cst_93 = arith.constant dense<0.000000e+00> : vector<16xf32>
    %246 = vector.multi_reduction <add>, %245, %cst_93 [1] : vector<16x128xf32> to vector<16xf32>
    %247 = vector.shape_cast %246 : vector<16xf32> to vector<16x1xf32>
    %cst_94 = arith.constant 1.280000e+02 : f32
    %248 = vector.broadcast %cst_94 : f32 to vector<16x1xf32>
    %249 = arith.divf %247, %248 : vector<16x1xf32>
    %cst_95 = arith.constant 9.99999974E-6 : f32
    %250 = vector.broadcast %cst_95 : f32 to vector<16x1xf32>
    %251 = arith.addf %249, %250 : vector<16x1xf32>
    %252 = math.rsqrt %251 : vector<16x1xf32>
    %253 = vector.broadcast %252 : vector<16x1xf32> to vector<16x128xf32>
    %254 = arith.mulf %244, %253 : vector<16x128xf32>
    %255 = vector.broadcast %236 : vector<1x128xf32> to vector<16x128xf32>
    %256 = arith.mulf %254, %255 : vector<16x128xf32>
    %257 = vector.broadcast %238 : vector<1x128xf32> to vector<16x128xf32>
    %258 = arith.addf %256, %257 : vector<16x128xf32>
    %259 = vector.shape_cast %258 : vector<16x128xf32> to vector<2x8x128xf32>
    %c0_96 = arith.constant 0 : index
    %c0_97 = arith.constant 0 : index
    %c0_98 = arith.constant 0 : index
    %260 = vector.load %arg15[%c0_96, %c0_97, %c0_98] : memref<2x8x128xf32, #tpu.memory_space<vmem>>, vector<2x8x128xf32>
    tpu.vector_store %arg15[%c0_96, %c0_97, %c0_98], %259 {strides = array<i32>} : memref<2x8x128xf32, #tpu.memory_space<vmem>>, vector<2x8x128xf32>,
    return
  }
  func.func @transform_0(%arg0: i32, %arg1: i32) -> (i32, i32, i32) {
    %c0_i32 = arith.constant 0 : i32
    %c0_i32_0 = arith.constant 0 : i32
    %c0_i32_1 = arith.constant 0 : i32
    return %arg0, %c0_i32, %c0_i32_0 : i32, i32, i32
  }
  func.func @transform_1(%arg0: i32, %arg1: i32) -> (i32, i32, i32) {
    %c0_i32 = arith.constant 0 : i32
    %c0_i32_0 = arith.constant 0 : i32
    %c0_i32_1 = arith.constant 0 : i32
    return %arg1, %c0_i32, %c0_i32_0 : i32, i32, i32
  }
  func.func @transform_2(%arg0: i32, %arg1: i32) -> (i32, i32, i32) {
    %c0_i32 = arith.constant 0 : i32
    %c0_i32_0 = arith.constant 0 : i32
    %c0_i32_1 = arith.constant 0 : i32
    return %arg1, %c0_i32, %c0_i32_0 : i32, i32, i32
  }
  func.func @transform_3(%arg0: i32, %arg1: i32) -> (i32, i32, i32) {
    %c0_i32 = arith.constant 0 : i32
    %c0_i32_0 = arith.constant 0 : i32
    %c0_i32_1 = arith.constant 0 : i32
    return %arg1, %c0_i32, %c0_i32_0 : i32, i32, i32
  }
  func.func @transform_4(%arg0: i32, %arg1: i32) -> (i32, i32, i32) {
    %c0_i32 = arith.constant 0 : i32
    %c0_i32_0 = arith.constant 0 : i32
    %c0_i32_1 = arith.constant 0 : i32
    return %arg1, %c0_i32, %c0_i32_0 : i32, i32, i32
  }
  func.func @transform_5(%arg0: i32, %arg1: i32) -> (i32, i32, i32) {
    %c0_i32 = arith.constant 0 : i32
    %c0_i32_0 = arith.constant 0 : i32
    %c0_i32_1 = arith.constant 0 : i32
    return %arg1, %c0_i32, %c0_i32_0 : i32, i32, i32
  }
  func.func @transform_6(%arg0: i32, %arg1: i32) -> (i32, i32, i32) {
    %c0_i32 = arith.constant 0 : i32
    %c0_i32_0 = arith.constant 0 : i32
    %c0_i32_1 = arith.constant 0 : i32
    return %arg1, %c0_i32, %c0_i32_0 : i32, i32, i32
  }
  func.func @transform_7(%arg0: i32, %arg1: i32) -> (i32, i32, i32) {
    %c0_i32 = arith.constant 0 : i32
    %c0_i32_0 = arith.constant 0 : i32
    %c0_i32_1 = arith.constant 0 : i32
    return %arg1, %c0_i32, %c0_i32_0 : i32, i32, i32
  }
  func.func @transform_8(%arg0: i32, %arg1: i32) -> (i32, i32, i32) {
    %c0_i32 = arith.constant 0 : i32
    %c0_i32_0 = arith.constant 0 : i32
    %c0_i32_1 = arith.constant 0 : i32
    return %arg1, %c0_i32, %c0_i32_0 : i32, i32, i32
  }
  func.func @transform_9(%arg0: i32, %arg1: i32) -> (i32, i32, i32) {
    %c0_i32 = arith.constant 0 : i32
    %c0_i32_0 = arith.constant 0 : i32
    %c0_i32_1 = arith.constant 0 : i32
    return %arg1, %c0_i32, %c0_i32_0 : i32, i32, i32
  }
  func.func @transform_10(%arg0: i32, %arg1: i32) -> (i32, i32, i32) {
    %c0_i32 = arith.constant 0 : i32
    %c0_i32_0 = arith.constant 0 : i32
    %c0_i32_1 = arith.constant 0 : i32
    return %arg1, %c0_i32, %c0_i32_0 : i32, i32, i32
  }
  func.func @transform_11(%arg0: i32, %arg1: i32) -> (i32, i32, i32) {
    %c0_i32 = arith.constant 0 : i32
    %c0_i32_0 = arith.constant 0 : i32
    %c0_i32_1 = arith.constant 0 : i32
    return %arg1, %c0_i32, %c0_i32_0 : i32, i32, i32
  }
  func.func @transform_12(%arg0: i32, %arg1: i32) -> (i32, i32, i32) {
    %c0_i32 = arith.constant 0 : i32
    %c0_i32_0 = arith.constant 0 : i32
    %c0_i32_1 = arith.constant 0 : i32
    return %arg1, %c0_i32, %c0_i32_0 : i32, i32, i32
  }
  func.func @transform_13(%arg0: i32, %arg1: i32) -> (i32, i32, i32) {
    %c0_i32 = arith.constant 0 : i32
    %c0_i32_0 = arith.constant 0 : i32
    %c0_i32_1 = arith.constant 0 : i32
    return %arg0, %c0_i32, %c0_i32_0 : i32, i32, i32
  }
}

</mosaic_0001>

<bundles_post_ra>
// kernel: cross_sectional_transformer.1
= control target key start
LH: loop header
LB: loop body
LE: loop exit
PB: predicated region body
PF: predicated region fallthrough
CT: control target
= control target key end

     0   :  { %s4267_s25 = smov 0   ;;  %s4269_s26 = smov 0   ;;  %s4879_s0 = inlined_call_operand.vmem [shape: f32[2,8,128], index: 0, kind: input, shape index: {}]   ;;  %s4880_s1 = inlined_call_operand.vmem [shape: bf16[2,128,384], index: 1, kind: input, shape index: {}]   ;;  %s4881_s2 = inlined_call_operand.vmem [shape: f32[2,1,384], index: 2, kind: input, shape index: {}]   ;;  %s4882_s3 = inlined_call_operand.vmem [shape: bf16[2,128,128], index: 3, kind: input, shape index: {}]   ;;  %s4883_s4 = inlined_call_operand.vmem [shape: f32[2,1,128], index: 4, kind: input, shape index: {}]   ;;  %s4884_s5 = inlined_call_operand.vmem [shape: f32[2,1,128], index: 5, kind: input, shape index: {}]   ;;  %s4885_s6 = inlined_call_operand.vmem [shape: f32[2,1,128], index: 6, kind: input, shape index: {}]   ;;  %s4886_s7 = inlined_call_operand.vmem [shape: bf16[2,128,256], index: 7, kind: input, shape index: {}]   ;;  %s4887_s8 = inlined_call_operand.vmem [shape: f32[2,1,256], index: 8, kind: input, shape index: {}]   ;;  %s4888_s9 = inlined_call_operand.vmem [shape: bf16[2,256,128], index: 9, kind: input, shape index: {}]   ;;  %s4889_s10 = inlined_call_operand.vmem [shape: f32[2,1,128], index: 10, kind: input, shape index: {}]   ;;  %s4890_s11 = inlined_call_operand.vmem [shape: f32[2,1,128], index: 11, kind: input, shape index: {}]   ;;  %s4891_s12 = inlined_call_operand.vmem [shape: f32[2,1,128], index: 12, kind: input, shape index: {}]   ;;  %s4892_s13 = inlined_call_operand.vmem [shape: f32[2,8,128], index: 13, kind: output, shape index: {}]  }
   0x1   :  { %4898 = sst [smem:[#allocation6_spill]] %s4879_s0  ;;  %s4271_s27 = smov 0  }
   0x2   :  { %4899 = sst [smem:[#allocation7_spill]] %s4880_s1 }
   0x3   :  { %4900 = sst [smem:[#allocation8_spill]] %s4881_s2 }
   0x4   :  { %4901 = sst [smem:[#allocation9_spill]] %s4882_s3 }
   0x5   :  { %4902 = sst [smem:[#allocation10_spill]] %s4886_s7 }
   0x6   :  { %4903 = sst [smem:[#allocation11_spill]] %s4892_s13 }
   0x7 LB: > { %4904 = sst [smem:[#allocation3_spill]] %s4181_s26  ;;  %s32_s28 = sadd.s32 1, %s4181_s26  ;;  %s4185_s27 = sphi %s4271_s27, %s23_s27   ;;  %s4181_s26 = sphi %s4269_s26, %s4919_s26   ;;  %s4177_s25 = sphi %s4267_s25, %s4918_s25  }
   0x8   : > { %4905 = sst [smem:[#allocation4_spill]] %s4185_s27  ;;  %p3506_p0 = scmp.ge.s32.totalorder %s4185_s27, 1 }
   0x9   : > { %p33_p1 = scmp.ge.s32.totalorder %s32_s28, 2  ;;  %p506_p2 = scmp.lt.s32.totalorder %s4185_s27, 3 }
   0xb   : > { %s4921_s28 = smov (%p33_p1, %s32_s28), 0  ;;  %p507_p3 = pnand %p3506_p0, %p506_p2 }
   0xc   : > { %4906 = sst [smem:[#allocation5_spill]] %s4921_s28  ;;  %p602_p4 = scmp.lt.s32.totalorder (!%p507_p3), %s4177_s25, 1 }
   0xd   : > { %510 = sbr.rel (%p507_p3) target bundleno = 6265 (0x1879), region = 72  ;;  %s4907_s3 = sld [smem:[#allocation9_spill]] (!%p507_p3) }
   0xe   : > { %s4908_s1 = sld [smem:[#allocation7_spill]] (!%p507_p3)  ;;  %s4909_s2 = sld [smem:[#allocation8_spill]] (!%p507_p3) }
   0xf   : > { %s4910_s7 = sld [smem:[#allocation10_spill]] (!%p507_p3)  ;;  %p3515_p5 = scmp.ne.s32.totalorder (!%p507_p3), %s4177_s25, 0 }
  0x14   : > { %s4289_s29 = scalar_select %p602_p4, %s4177_s25, 1 }
  0x15   : > { %s4911_s23 = sld [smem:[#allocation6_spill]] (!%p3515_p5) }
  0x16   : > { %s3973_s30 = smul.u32 192, %s4289_s29  ;;  %s3628_s14 = sshll.u32 %s4289_s29, 6 }
  0x17   : > { %s3974_s15 = smul.u32 3, %s4289_s29  ;;  %s4297_s18 = scalar_lea.vmem %s4907_s3, %s3628_s14 }
  0x18   : > { %s4302_s21 = scalar_lea.vmem %s4908_s1, %s3973_s30  ;;  %s3629_s19 = sshll.u32 %s4289_s29, 7 }
  0x19   : > { %s4311_s27 = scalar_lea.vmem %s4909_s2, %s3974_s15  ;;  %s4325_s1 = scalar_lea.vmem %s4910_s7, %s3629_s19 }
  0x1a   : > { %s3512_s22 = sshll.u32 %s4289_s29, 1  ;;  %s4336_s0 = scalar_lea.vmem %s4888_s9, %s3629_s19 }
  0x1b   : > { %s4331_s26 = scalar_lea.vmem %s4887_s8, %s3512_s22  ;;  %s641_s17 = scalar_lea.vmem %s4889_s10, %s4289_s29  ;;  %v659_v0 = vld [vmem:[%s4911_s23] sm:$0xff] (!%p3515_p5)  ;;  %v660_v1 = vld [vmem:[%s4911_s23 + $0x8] sm:$0xff] (!%p3515_p5) }
  0x1c   : > { %s644_s30 = scalar_lea.vmem %s4890_s11, %s4289_s29  ;;  %s647_s7 = scalar_lea.vmem %s4891_s12, %s4289_s29 }
  0x1d   : > { %658 = sbr.rel (%p3515_p5) target bundleno = 36 (0x24), region = 76  ;;  %s4912_s14 = sld [smem:[#allocation11_spill]] (!%p3515_p5) }
  0x23   : > { %661 = vst [vmem:[%s4912_s14] sm:$0xff] (!%p3515_p5), %v659_v0  ;;  %662 = vst [vmem:[%s4912_s14 + $0x8] sm:$0xff] (!%p3515_p5), %v660_v1 }
  0x24 PF: > { %v4009_v2 = vld [vmem:[%s4302_s21 + $0x4] ss:$12 sps:$4 sm:$0xff]   ;;  %v4011_v3 = vld [vmem:[%s4302_s21] ss:$12 sps:$4 sm:$0xff]   ;;  %v4187_v4 = vmov 0   ;;  %v4188_v5 = vmov 0.0   ;;  %v700_v31 = vlaneseq  ;;  %s4914_s16 = scalar_lea.vmem %s4883_s4, %s4289_s29 }
  0x25   : > { %875 = vmatprep.mubr.bf16.mxu0 %v4187_v4  ;;  %3741 = vmatprep.subr.bf16.mxu1 %v4188_v5  ;;  %v4012_v6 = vld [vmem:[%s4302_s21 + $0x1c] ss:$12 sps:$4 sm:$0xff]   ;;  %v4014_v7 = vld [vmem:[%s4302_s21 + $0x18] ss:$12 sps:$4 sm:$0xff]   ;;  %v4015_v8 = vld [vmem:[%s4302_s21 + $0x34] ss:$12 sps:$4 sm:$0xff]  }
  0x26   : > { %843 = vmatprep.subr.bf16.mxu0 %v4009_v2  ;;  %v4017_v9 = vld [vmem:[%s4302_s21 + $0x30] ss:$12 sps:$4 sm:$0xff]   ;;  %v4018_v10 = vld [vmem:[%s4302_s21 + $0x4c] ss:$12 sps:$4 sm:$0xff]   ;;  %v4020_v11 = vld [vmem:[%s4302_s21 + $0x48] ss:$12 sps:$4 sm:$0xff]  }
  0x27   : > { %844 = vmatpush1.bf16.msra.mxu0 %v4011_v3  ;;  %v4021_v12 = vld [vmem:[%s4302_s21 + $0x64] ss:$12 sps:$4 sm:$0xff]   ;;  %v4033_v13 = vld [vmem:[%s4302_s21 + $0x8] ss:$12 sps:$4 sm:$0xff]   ;;  %v4034_v14 = vld [vmem:[%s4302_s21 + $0x20] ss:$12 sps:$4 sm:$0xff]  }
  0x28   : > { %845 = vmatprep.subr.bf16.mxu0 %v4012_v6  ;;  %3742 = vmatpush3.bf16.msra.mxu1 %v4033_v13  ;;  %v4023_v15 = vld [vmem:[%s4302_s21 + $0x60] ss:$12 sps:$4 sm:$0xff]   ;;  %v4024_v16 = vld [vmem:[%s4302_s21 + $0x7c] ss:$12 sps:$4 sm:$0xff]   ;;  %v4035_v17 = vld [vmem:[%s4302_s21 + $0x38] ss:$12 sps:$4 sm:$0xff]  }
  0x29   : > { %3743 = vmatprep.subr.bf16.mxu1 %v4188_v5  ;;  %v4026_v18 = vld [vmem:[%s4302_s21 + $0x78] ss:$12 sps:$4 sm:$0xff]   ;;  %v4027_v19 = vld [vmem:[%s4302_s21 + $0x94] ss:$12 sps:$4 sm:$0xff]   ;;  %v4036_v20 = vld [vmem:[%s4302_s21 + $0x50] ss:$12 sps:$4 sm:$0xff]  }
  0x2a   : > { %v4029_v21 = vld [vmem:[%s4302_s21 + $0x90] ss:$12 sps:$4 sm:$0xff]   ;;  %v4030_v22 = vld [vmem:[%s4302_s21 + $0xac] ss:$12 sps:$4 sm:$0xff]   ;;  %v4037_v23 = vld [vmem:[%s4302_s21 + $0x68] ss:$12 sps:$4 sm:$0xff]  }
  0x2b   : > { %846 = vmatpush1.bf16.msra.mxu0 %v4014_v7  ;;  %v4032_v24 = vld [vmem:[%s4302_s21 + $0xa8] ss:$12 sps:$4 sm:$0xff]   ;;  %s4913_s20 = sld [smem:[#allocation11_spill]]  ;;  %v4038_v27 = vld [vmem:[%s4302_s21 + $0x80] ss:$12 sps:$4 sm:$0xff]   ;;  %vm4189_vm0 = vmmov 0  }
  0x2c   : > { %847 = vmatprep.subr.bf16.mxu0 %v4015_v8  ;;  %3744 = vmatpush3.bf16.msra.mxu1 %v4034_v14  ;;  %v4039_v29 = vld [vmem:[%s4302_s21 + $0x98] ss:$12 sps:$4 sm:$0xff]   ;;  %v4040_v30 = vld [vmem:[%s4302_s21 + $0xb0] ss:$12 sps:$4 sm:$0xff]   ;;  %v4410_v32 = vshrl.u32 %v700_v31, 7  ;;  %vm945_vm1 = vcmask 130048  }
  0x2d   : > { %3745 = vmatprep.subr.bf16.mxu1 %v4188_v5  ;;  %3757 = vmatprep.mubr.msk.bf16.mxu1 %vm4189_vm0, %v4188_v5  ;;  %v698_v34 = vld [vmem:[%s4311_s27] sm:$0x7]  ;;  %vm1066_vm2 = vcmask 1043456   ;;  %vm1038_vm3 = vcmask 64512   ;;  %s4190_s27 = smov 112   ;;  %s4191_s21 = smov 96  }
  0x2e   : > { %v706_v33 = vsub.s32 1, %v4410_v32  ;;  %v702_v36 = vsub.s32 0, %v4410_v32  ;;  %v710_v52 = vsub.s32 2, %v4410_v32  ;;  %s4192_s19 = smov 80   ;;  %s4193_s28 = smov 64   ;;  %vm1386_vm4 = vcmask 261248  }
  0x2f   : > { %848 = vmatpush1.bf16.msra.mxu0 %v4017_v9  ;;  %s4194_s15 = smov 48   ;;  %s4195_s13 = smov 32   ;;  %vm1617_vm5 = vcmask 392448   ;;  %vm1848_vm6 = vcmask 523648   ;;  %vm2079_vm7 = vcmask 654848   ;;  %vm2310_vm8 = vcmask 786048  }
  0x30   : > { %849 = vmatprep.subr.bf16.mxu0 %v4018_v10  ;;  %3746 = vmatpush3.bf16.msra.mxu1 %v4035_v17  ;;  %v707_v35 = vrot.slane %v698_v34, %v706_v33  ;;  %v703_v42 = vrot.slane %v698_v34, %v702_v36  ;;  %v711_v53 = vrot.slane %v698_v34, %v710_v52  ;;  %s4196_s14 = smov 16   ;;  %vm2541_vm9 = vcmask 917248   ;;  %v3605_v32 = vld [vmem:[%s641_s17] ss:$0 sm:$0xff] }
  0x31   : > { %3747 = vmatprep.subr.bf16.mxu1 %v4188_v5  ;;  %v663_v25 = vld [vmem:[%s4913_s20] sm:$0xff]  ;;  %v664_v26 = vld [vmem:[%s4913_s20 + $0x8] sm:$0xff]  ;;  %vm2772_vm10 = vcmask 1048448  }
  0x32   : > { %v665_v28 = vpack.c.bf16 %v664_v26, %v663_v25 }
  0x33   : > { %850 = vmatpush1.bf16.msra.mxu0 %v4020_v11 }
  0x34   : > { %851 = vmatprep.subr.bf16.mxu0 %v4021_v12  ;;  %3748 = vmatpush3.bf16.msra.mxu1 %v4036_v20 }
  0x35   : > { %3749 = vmatprep.subr.bf16.mxu1 %v4188_v5 }
  0x37   : > { %852 = vmatpush1.bf16.msra.mxu0 %v4023_v15 }
  0x38   : > { %853 = vmatprep.subr.bf16.mxu0 %v4024_v16  ;;  %3750 = vmatpush3.bf16.msra.mxu1 %v4037_v23 }
  0x39   : > { %3751 = vmatprep.subr.bf16.mxu1 %v4188_v5 }
  0x3b   : > { %854 = vmatpush1.bf16.msra.mxu0 %v4026_v18 }
  0x3c   : > { %855 = vmatprep.subr.bf16.mxu0 %v4027_v19  ;;  %3752 = vmatpush3.bf16.msra.mxu1 %v4038_v27 }
  0x3d   : > { %3753 = vmatprep.subr.bf16.mxu1 %v4188_v5 }
  0x3f   : > { %856 = vmatpush1.bf16.msra.mxu0 %v4029_v21 }
  0x40   : > { %857 = vmatprep.subr.bf16.mxu0 %v4030_v22  ;;  %3754 = vmatpush3.bf16.msra.mxu1 %v4039_v29 }
  0x41   : > { %3755 = vmatprep.subr.bf16.mxu1 %v4188_v5 }
  0x43   : > { %858 = vmatpush1.bf16.msra.mxu0 %v4032_v24 }
  0x44   : > { %3785 = vmatprep.subr.bf16.mxu0 %v4188_v5  ;;  %3756 = vmatpush3.bf16.msra.mxu1 %v4040_v30 }
  0x45   : > { %3761 = vmatprep.subr.bf16.mxu1 %v4188_v5 }
  0x46   : > { %876 = vmatmul.mubr.bf16.vlgmr.msra.gmra.mrb[0].mxu0 %v665_v28 }
  0x47   : > { %3787 = vmatprep.mubr.msk.bf16.mxu0 %vm4189_vm0, %v4188_v5  ;;  %3758 = vmatmul.mubr.bf16.vlgmr.msra.gmra.mrb[0].mxu1 %v665_v28 }
  0x48   : > { %3763 = vmatprep.mubr.msk.bf16.mxu1 %vm4189_vm0, %v4188_v5 }
 0x119   : > { %v877_v37 = vpop.f32.mrb[0].mxu0 }
 0x11a   : > { %v879_v38 = vpop.f32.mrb[1].mxu0  ;;  %v878_v46 = vadd.f32 %v877_v37, %v703_v42  ;;  %v920_v54 = vpop.f32.mrb[0].mxu1 }
 0x11b   : > { %v880_v39 = vadd.f32 %v879_v38, %v707_v35  ;;  %v881_v40 = vpop.f32.mrb[2].mxu0  ;;  %v921_v55 = vadd.f32 %v920_v54, %v711_v53  ;;  %v3759_v56 = vpop.f32.mrb[1].mxu1 }
 0x11c   : > { %v883_v41 = vpop.f32.mrb[3].mxu0  ;;  %v4426_v48 = vpack.c.bf16 %v878_v46, %v878_v46  ;;  %v882_v50 = vadd.f32 %v881_v40, %v703_v42  ;;  %v923_v57 = vpop.f32.mrb[2].mxu1 }
 0x11d   : > { %v4419_v43 = vpack.c.bf16 %v880_v39, %v880_v39  ;;  %v884_v44 = vadd.f32 %v883_v41, %v707_v35  ;;  %v4442_v58 = vpack.c.bf16 %v921_v55, %v921_v55  ;;  %v924_v59 = vadd.f32 %v923_v57, %v711_v53  ;;  %v3760_v60 = vpop.f32.mrb[3].mxu1 }
 0x11e   : > { %v4435_v51 = vpack.c.bf16 %v882_v50, %v882_v50 }
 0x11f   : > { %v950_v45 = vsel %vm945_vm1, %v4419_v43, 0  ;;  %v4424_v47 = vpack.c.bf16 %v884_v44, %v884_v44  ;;  %v1068_v61 = vsel %vm1066_vm2, %v4442_v58, 0  ;;  %v4461_v24 = vpack.c.bf16 %v924_v59, %v924_v59 }
 0x120   : > { %3762 = vmatpush3.bf16.xpose.msra.mxu1 %v950_v45 }
 0x121   : > { %3767 = vmatprep.subr.bf16.mxu1 %v4188_v5  ;;  %v996_v49 = vsel %vm945_vm1, %v4424_v47, 0  ;;  %v1114_v27 = vsel %vm1066_vm2, %v4461_v24, 0 }
 0x127   : > { %3764 = vmatmul.mubr.msk.bf16.vlgmr.msra.gmra.mrb[4].mxu1 %vm945_vm1, %v4426_v48 }
 0x128   : > { %3768 = vmatpush3.bf16.xpose.msra.mxu1 %v996_v49  ;;  %3769 = vmatprep.mubr.msk.bf16.mxu1 %vm4189_vm0, %v4188_v5 }
 0x129   : > { %3773 = vmatprep.subr.bf16.mxu1 %v4188_v5 }
 0x12f   : > { %3770 = vmatmul.mubr.msk.bf16.vlgmr.msra.gmra.mrb[8].mxu1 %vm945_vm1, %v4435_v51 }
 0x130   : > { %3775 = vmatprep.mubr.msk.bf16.mxu1 %vm4189_vm0, %v4188_v5  ;;  %3774 = vmatpush3.bf16.msra.mxu1 %v1068_v61 }
 0x131   : > { %3779 = vmatprep.subr.bf16.mxu1 %v4188_v5 }
 0x1fa   : > { %v986_v62 = vpop.f32.mrb[4].mxu1 }
 0x1fb   : > { %v3765_v63 = vpop.f32.mrb[5].mxu1  ;;  %v1039_v0 = vsel %vm1038_vm3, %v986_v62, -inf }
 0x1fc   : > { %1040 = vmax.xlane.f32.xlu0 %v1039_v0  ;;  %v989_v1 = vpop.f32.mrb[6].mxu1 }
 0x1fd   : > { %v3766_v2 = vpop.f32.mrb[7].mxu1 }
 0x202   : > { %v1032_v3 = vpop.f32.mrb[8].mxu1 }
 0x203   : > { %v3771_v6 = vpop.f32.mrb[9].mxu1  ;;  %v1042_v7 = vsel %vm1038_vm3, %v1032_v3, -inf }
 0x204   : > { %1043 = vmax.xlane.f32.xlu0 %v1042_v7  ;;  %v1035_v8 = vpop.f32.mrb[10].mxu1 }
 0x205   : > { %v3772_v9 = vpop.f32.mrb[11].mxu1 }
 0x21a   : > { %1160 = vrot.lane.b32.xlu0 %v4419_v43, %s4190_s27 }
 0x289   : > { %v1041_v10 = vpop.xlane.xlu0 %1040 }
 0x28a   : > { %v1045_v11 = vsub.f32 %v986_v62, %v1041_v10 }
 0x28c   : > { %v1047_v12 = vmul.f32 1.442695, %v1045_v11 }
 0x28e   : > { %4089 = vpow2.f32 %v1047_v12 }
 0x291   : > { %v1044_v13 = vpop.xlane.xlu0 %1043 }
 0x292   : > { %v1046_v18 = vsub.f32 %v1032_v3, %v1044_v13 }
 0x294   : > { %v1049_v19 = vmul.f32 1.442695, %v1046_v18 }
 0x295   : > { %v1161_v14 = vpop.permute.xlu0 %1160 }
 0x296   : > { %v1166_v15 = vsel %vm945_vm1, %v1161_v14, 0  ;;  %4091 = vpow2.f32 %v1049_v19 }
 0x297   : > { %3786 = vmatpush3.bf16.xpose.msra.mxu0 %v1166_v15 }
 0x298   : > { %v4090_v16 = vpop.eup %4089  ;;  %3797 = vmatprep.subr.bf16.mxu0 %v4188_v5 }
 0x299   : > { %v1051_v17 = vsel %vm1038_vm3, %v4090_v16, 0.0 }
 0x29a   : > { %1052 = vadd.xlane.f32.xlu1 %v1051_v17 }
 0x2a0   : > { %v4092_v20 = vpop.eup %4091 }
 0x2a1   : > { %v1054_v21 = vsel %vm1038_vm3, %v4092_v20, 0.0 }
 0x2ab   : > { %1210 = vrot.lane.b32.xlu1 %v4424_v47, %s4190_s27 }
 0x2cf   : > { %1055 = vadd.xlane.f32.xlu1 %v1054_v21 }
 0x2e0   : > { %1158 = vrot.lane.b32.xlu1 %v4426_v48, %s4190_s27 }
 0x2e4   : > { %1208 = vrot.lane.b32.xlu1 %v4435_v51, %s4190_s27 }
 0x327   : > { %v1053_v22 = vpop.xlane.xlu1 %1052 }
 0x328   : > { %4093 = vrcp.f32 %v1053_v22 }
 0x32b   : > { %v1211_v28 = vpop.permute.xlu1 %1210 }
 0x32c   : > { %v1216_v37 = vsel %vm945_vm1, %v1211_v28, 0 }
 0x332   : > { %v4094_v23 = vpop.eup %4093 }
 0x333   : > { %v1059_v25 = vmul.f32 %v4094_v23, %v4090_v16 }
 0x335   : > { %v1061_v26 = vpack.c.bf16 %v1059_v25, %v1059_v25 }
 0x337   : > { %3776 = vmatmul.mubr.msk.bf16.vlgmr.msra.gmra.mrb[12].mxu1 %vm1038_vm3, %v1061_v26 }
 0x338   : > { %3780 = vmatpush3.bf16.msra.mxu1 %v1114_v27  ;;  %3781 = vmatprep.mubr.msk.bf16.mxu1 %vm4189_vm0, %v4188_v5 }
 0x339   : > { %3791 = vmatprep.subr.bf16.mxu1 %v4188_v5 }
 0x35c   : > { %v1056_v29 = vpop.xlane.xlu1 %1055 }
 0x35d   : > { %4095 = vrcp.f32 %v1056_v29 }
 0x360   : > { %v1159_v30 = vpop.permute.xlu1 %1158 }
 0x361   : > { %3788 = vmatmul.mubr.msk.bf16.vlgmr.msra.gmra.mrb[4].mxu0 %vm945_vm1, %v1159_v30 }
 0x362   : > { %3799 = vmatprep.mubr.msk.bf16.mxu0 %vm4189_vm0, %v4188_v5 }
 0x364   : > { %v1209_v38 = vpop.permute.xlu1 %1208 }
 0x367   : > { %v4096_v31 = vpop.eup %4095 }
 0x368   : > { %v1060_v34 = vmul.f32 %v4096_v31, %v4092_v20 }
 0x36a   : > { %v1062_v35 = vpack.c.bf16 %v1060_v34, %v1060_v34 }
 0x36c   : > { %3782 = vmatmul.mubr.msk.bf16.vlgmr.msra.gmra.mrb[16].mxu1 %vm1038_vm3, %v1062_v35 }
 0x36d   : > { %3792 = vmatpush3.bf16.xpose.msra.mxu1 %v1216_v37  ;;  %3793 = vmatprep.mubr.msk.bf16.mxu1 %vm4189_vm0, %v4188_v5 }
 0x36e   : > { %3803 = vmatprep.subr.bf16.mxu1 %v4188_v5 }
 0x374   : > { %3794 = vmatmul.mubr.msk.bf16.vlgmr.msra.gmra.mrb[20].mxu1 %vm945_vm1, %v1209_v38 }
 0x375   : > { %3805 = vmatprep.mubr.msk.bf16.mxu1 %vm4189_vm0, %v4188_v5 }
 0x40a   : > { %v1104_v39 = vpop.f32.mrb[12].mxu1 }
 0x40b   : > { %1156 = vst.msk [vmem:[#allocation2] sm:$0xff] %vm945_vm1, %v1104_v39  ;;  %v3777_v40 = vpop.f32.mrb[13].mxu1 }
 0x40c   : > { %v1107_v41 = vpop.f32.mrb[14].mxu1 }
 0x40d   : > { %v3778_v42 = vpop.f32.mrb[15].mxu1 }
 0x434   : > { %v1202_v44 = vpop.f32.mrb[4].mxu0 }
 0x435   : > { %v3789_v45 = vpop.f32.mrb[5].mxu0  ;;  %v1258_v46 = vsel %vm1038_vm3, %v1202_v44, -inf }
 0x436   : > { %1259 = vmax.xlane.f32.xlu0 %v1258_v46  ;;  %v1205_v49 = vpop.f32.mrb[6].mxu0 }
 0x437   : > { %v3790_v50 = vpop.f32.mrb[7].mxu0 }
 0x43f   : > { %v1150_v52 = vpop.f32.mrb[16].mxu1 }
 0x440   : > { %1157 = vst.msk [vmem:[#allocation2 + $0x8] sm:$0xff] %vm945_vm1, %v1150_v52  ;;  %v3783_v53 = vpop.f32.mrb[17].mxu1 }
 0x441   : > { %v1153_v54 = vpop.f32.mrb[18].mxu1 }
 0x442   : > { %v3784_v55 = vpop.f32.mrb[19].mxu1 }
 0x447   : > { %v1252_v56 = vpop.f32.mrb[20].mxu1 }
 0x448   : > { %v3795_v57 = vpop.f32.mrb[21].mxu1  ;;  %v1261_v59 = vsel %vm1038_vm3, %v1252_v56, -inf }
 0x449   : > { %1262 = vmax.xlane.f32.xlu1 %v1261_v59  ;;  %v1255_v60 = vpop.f32.mrb[22].mxu1 }
 0x44a   : > { %v3796_v61 = vpop.f32.mrb[23].mxu1 }
 0x45a   : > { %1330 = vrot.lane.b32.xlu1 %v4461_v24, %s4190_s27 }
 0x45e   : > { %1391 = vrot.lane.b32.xlu1 %v4419_v43, %s4191_s21 }
 0x462   : > { %1441 = vrot.lane.b32.xlu1 %v4424_v47, %s4191_s21 }
 0x466   : > { %1439 = vrot.lane.b32.xlu1 %v4435_v51, %s4191_s21 }
 0x4c3   : > { %v1260_v62 = vpop.xlane.xlu0 %1259 }
 0x4c4   : > { %v1264_v63 = vsub.f32 %v1202_v44, %v1260_v62 }
 0x4c6   : > { %v1266_v0 = vmul.f32 1.442695, %v1264_v63 }
 0x4c8   : > { %4097 = vpow2.f32 %v1266_v0 }
 0x4d2   : > { %v4098_v1 = vpop.eup %4097 }
 0x4d3   : > { %v1270_v2 = vsel %vm1038_vm3, %v4098_v1, 0.0 }
 0x4d4   : > { %1271 = vadd.xlane.f32.xlu0 %v1270_v2 }
 0x4d6   : > { %v1263_v3 = vpop.xlane.xlu1 %1262 }
 0x4d7   : > { %v1265_v6 = vsub.f32 %v1252_v56, %v1263_v3 }
 0x4d9   : > { %v1268_v7 = vmul.f32 1.442695, %v1265_v6 }
 0x4da   : > { %v1331_v8 = vpop.permute.xlu1 %1330 }
 0x4db   : > { %4099 = vpow2.f32 %v1268_v7  ;;  %v1336_v9 = vsel %vm1066_vm2, %v1331_v8, 0 }
 0x4dc   : > { %3804 = vmatpush3.bf16.msra.mxu1 %v1336_v9 }
 0x4dd   : > { %3815 = vmatprep.subr.bf16.mxu1 %v4188_v5 }
 0x4de   : > { %v1392_v18 = vpop.permute.xlu1 %1391 }
 0x4df   : > { %v1397_v23 = vsel %vm945_vm1, %v1392_v18, 0 }
 0x4e2   : > { %v1442_v22 = vpop.permute.xlu1 %1441 }
 0x4e3   : > { %v1447_v26 = vsel %vm945_vm1, %v1442_v22, 0 }
 0x4e5   : > { %v4100_v10 = vpop.eup %4099 }
 0x4e6   : > { %v1273_v11 = vsel %vm1038_vm3, %v4100_v10, 0.0  ;;  %v1440_v28 = vpop.permute.xlu1 %1439 }
 0x4e7   : > { %1274 = vadd.xlane.f32.xlu0 %v1273_v11 }
 0x4fd   : > { %1282 = vrot.lane.b32.xlu0 %v4442_v58, %s4190_s27 }
 0x501   : > { %1389 = vrot.lane.b32.xlu0 %v4426_v48, %s4191_s21 }
 0x561   : > { %v1272_v12 = vpop.xlane.xlu0 %1271 }
 0x562   : > { %4101 = vrcp.f32 %v1272_v12 }
 0x56c   : > { %v4102_v13 = vpop.eup %4101 }
 0x56d   : > { %v1278_v15 = vmul.f32 %v4102_v13, %v4098_v1 }
 0x56f   : > { %v1280_v19 = vpack.c.bf16 %v1278_v15, %v1278_v15 }
 0x574   : > { %v1275_v14 = vpop.xlane.xlu0 %1274 }
 0x575   : > { %4103 = vrcp.f32 %v1275_v14 }
 0x578   : > { %v1283_v16 = vpop.permute.xlu0 %1282 }
 0x579   : > { %v1288_v17 = vsel %vm1066_vm2, %v1283_v16, 0 }
 0x57a   : > { %3798 = vmatpush3.bf16.msra.mxu0 %v1288_v17 }
 0x57b   : > { %3809 = vmatprep.subr.bf16.mxu0 %v4188_v5 }
 0x57c   : > { %v1390_v27 = vpop.permute.xlu0 %1389 }
 0x57d   : > { %3800 = vmatmul.mubr.msk.bf16.vlgmr.msra.gmra.mrb[8].mxu0 %vm1038_vm3, %v1280_v19 }
 0x57e   : > { %3811 = vmatprep.mubr.msk.bf16.mxu0 %vm4189_vm0, %v4188_v5 }
 0x57f   : > { %v4104_v20 = vpop.eup %4103 }
 0x580   : > { %v1279_v21 = vmul.f32 %v4104_v20, %v4100_v10 }
 0x582   : > { %v1281_v25 = vpack.c.bf16 %v1279_v21, %v1279_v21 }
 0x583   : > { %3810 = vmatpush3.bf16.xpose.msra.mxu0 %v1397_v23 }
 0x584   : > { %3806 = vmatmul.mubr.msk.bf16.vlgmr.msra.gmra.mrb[24].mxu1 %vm1038_vm3, %v1281_v25  ;;  %3821 = vmatprep.subr.bf16.mxu0 %v4188_v5 }
 0x585   : > { %3816 = vmatpush3.bf16.xpose.msra.mxu1 %v1447_v26  ;;  %3817 = vmatprep.mubr.msk.bf16.mxu1 %vm4189_vm0, %v4188_v5 }
 0x586   : > { %3827 = vmatprep.subr.bf16.mxu1 %v4188_v5 }
 0x58a   : > { %3812 = vmatmul.mubr.msk.bf16.vlgmr.msra.gmra.mrb[12].mxu0 %vm945_vm1, %v1390_v27 }
 0x58b   : > { %3823 = vmatprep.mubr.msk.bf16.mxu0 %vm4189_vm0, %v4188_v5 }
 0x58c   : > { %3818 = vmatmul.mubr.msk.bf16.vlgmr.msra.gmra.mrb[28].mxu1 %vm945_vm1, %v1440_v28 }
 0x58d   : > { %3829 = vmatprep.mubr.msk.bf16.mxu1 %vm4189_vm0, %v4188_v5 }
 0x650   : > { %v4518_v29 = vpop.f32.mrb[8].mxu0 }
 0x651   : > { %v3801_v30 = vpop.f32.mrb[9].mxu0 }
 0x652   : > { %v1327_v31 = vpop.f32.mrb[10].mxu0 }
 0x653   : > { %v3802_v34 = vpop.f32.mrb[11].mxu0 }
 0x657   : > { %v4520_v35 = vpop.f32.mrb[24].mxu1 }
 0x658   : > { %v3807_v37 = vpop.f32.mrb[25].mxu1 }
 0x659   : > { %v1375_v38 = vpop.f32.mrb[26].mxu1 }
 0x65a   : > { %v3808_v39 = vpop.f32.mrb[27].mxu1 }
 0x65d   : > { %v1433_v40 = vpop.f32.mrb[12].mxu0 }
 0x65e   : > { %v3813_v41 = vpop.f32.mrb[13].mxu0  ;;  %v1489_v42 = vsel %vm1038_vm3, %v1433_v40, -inf }
 0x65f   : > { %1490 = vmax.xlane.f32.xlu0 %v1489_v42  ;;  %v1436_v44 = vpop.f32.mrb[14].mxu0  ;;  %v1483_v45 = vpop.f32.mrb[28].mxu1 }
 0x660   : > { %v3814_v46 = vpop.f32.mrb[15].mxu0  ;;  %v3819_v49 = vpop.f32.mrb[29].mxu1  ;;  %v1492_v50 = vsel %vm1038_vm3, %v1483_v45, -inf }
 0x661   : > { %1493 = vmax.xlane.f32.xlu1 %v1492_v50  ;;  %v1486_v52 = vpop.f32.mrb[30].mxu1 }
 0x662   : > { %v3820_v53 = vpop.f32.mrb[31].mxu1 }
 0x672   : > { %1561 = vrot.lane.b32.xlu1 %v4461_v24, %s4191_s21 }
 0x676   : > { %1622 = vrot.lane.b32.xlu1 %v4419_v43, %s4192_s19 }
 0x67a   : > { %1672 = vrot.lane.b32.xlu1 %v4424_v47, %s4192_s19 }
 0x67e   : > { %1670 = vrot.lane.b32.xlu1 %v4435_v51, %s4192_s19 }
 0x6ec   : > { %v1491_v54 = vpop.xlane.xlu0 %1490 }
 0x6ed   : > { %v1495_v55 = vsub.f32 %v1433_v40, %v1491_v54 }
 0x6ee   : > { %v1494_v56 = vpop.xlane.xlu1 %1493 }
 0x6ef   : > { %v1497_v57 = vmul.f32 1.442695, %v1495_v55  ;;  %v1496_v59 = vsub.f32 %v1483_v45, %v1494_v56 }
 0x6f1   : > { %4105 = vpow2.f32 %v1497_v57  ;;  %v1499_v60 = vmul.f32 1.442695, %v1496_v59 }
 0x6f2   : > { %v1562_v61 = vpop.permute.xlu1 %1561 }
 0x6f3   : > { %4107 = vpow2.f32 %v1499_v60  ;;  %v1567_v62 = vsel %vm1066_vm2, %v1562_v61, 0 }
 0x6f4   : > { %3828 = vmatpush3.bf16.msra.mxu1 %v1567_v62 }
 0x6f5   : > { %3839 = vmatprep.subr.bf16.mxu1 %v4188_v5 }
 0x6f6   : > { %v1623_v10 = vpop.permute.xlu1 %1622 }
 0x6f7   : > { %v1628_v16 = vsel %vm945_vm1, %v1623_v10, 0 }
 0x6fa   : > { %v1673_v15 = vpop.permute.xlu1 %1672 }
 0x6fb   : > { %v4106_v63 = vpop.eup %4105  ;;  %v1678_v18 = vsel %vm945_vm1, %v1673_v15, 0 }
 0x6fc   : > { %v1501_v0 = vsel %vm1038_vm3, %v4106_v63, 0.0 }
 0x6fd   : > { %v4108_v1 = vpop.eup %4107  ;;  %1502 = vadd.xlane.f32.xlu0 %v1501_v0 }
 0x6fe   : > { %v1504_v2 = vsel %vm1038_vm3, %v4108_v1, 0.0  ;;  %v1671_v20 = vpop.permute.xlu1 %1670 }
 0x701   : > { %1505 = vadd.xlane.f32.xlu0 %v1504_v2 }
 0x717   : > { %1513 = vrot.lane.b32.xlu0 %v4442_v58, %s4191_s21 }
 0x71b   : > { %1620 = vrot.lane.b32.xlu0 %v4426_v48, %s4192_s19 }
 0x78a   : > { %v1503_v3 = vpop.xlane.xlu0 %1502 }
 0x78b   : > { %4109 = vrcp.f32 %v1503_v3 }
 0x78e   : > { %v1506_v6 = vpop.xlane.xlu0 %1505 }
 0x78f   : > { %4111 = vrcp.f32 %v1506_v6 }
 0x792   : > { %v1514_v7 = vpop.permute.xlu0 %1513 }
 0x793   : > { %v1519_v8 = vsel %vm1066_vm2, %v1514_v7, 0 }
 0x794   : > { %3822 = vmatpush3.bf16.msra.mxu0 %v1519_v8 }
 0x795   : > { %v4110_v9 = vpop.eup %4109  ;;  %3833 = vmatprep.subr.bf16.mxu0 %v4188_v5 }
 0x796   : > { %v1509_v11 = vmul.f32 %v4110_v9, %v4106_v63  ;;  %v1621_v19 = vpop.permute.xlu0 %1620 }
 0x798   : > { %v1511_v12 = vpack.c.bf16 %v1509_v11, %v1509_v11 }
 0x799   : > { %v4112_v13 = vpop.eup %4111 }
 0x79a   : > { %v1510_v14 = vmul.f32 %v4112_v13, %v4108_v1  ;;  %3824 = vmatmul.mubr.msk.bf16.vlgmr.msra.gmra.mrb[16].mxu0 %vm1038_vm3, %v1511_v12 }
 0x79b   : > { %3835 = vmatprep.mubr.msk.bf16.mxu0 %vm4189_vm0, %v4188_v5 }
 0x79c   : > { %v1512_v17 = vpack.c.bf16 %v1510_v14, %v1510_v14 }
 0x79d   : > { %3834 = vmatpush3.bf16.xpose.msra.mxu0 %v1628_v16 }
 0x79e   : > { %3830 = vmatmul.mubr.msk.bf16.vlgmr.msra.gmra.mrb[32].mxu1 %vm1038_vm3, %v1512_v17  ;;  %3845 = vmatprep.subr.bf16.mxu0 %v4188_v5 }
 0x79f   : > { %3840 = vmatpush3.bf16.xpose.msra.mxu1 %v1678_v18  ;;  %3841 = vmatprep.mubr.msk.bf16.mxu1 %vm4189_vm0, %v4188_v5 }
 0x7a0   : > { %3851 = vmatprep.subr.bf16.mxu1 %v4188_v5 }
 0x7a4   : > { %3836 = vmatmul.mubr.msk.bf16.vlgmr.msra.gmra.mrb[20].mxu0 %vm945_vm1, %v1621_v19 }
 0x7a5   : > { %3847 = vmatprep.mubr.msk.bf16.mxu0 %vm4189_vm0, %v4188_v5 }
 0x7a6   : > { %3842 = vmatmul.mubr.msk.bf16.vlgmr.msra.gmra.mrb[36].mxu1 %vm945_vm1, %v1671_v20 }
 0x7a7   : > { %3853 = vmatprep.mubr.msk.bf16.mxu1 %vm4189_vm0, %v4188_v5 }
 0x86d   : > { %v4558_v21 = vpop.f32.mrb[16].mxu0 }
 0x86e   : > { %v3825_v22 = vpop.f32.mrb[17].mxu0 }
 0x86f   : > { %v1558_v23 = vpop.f32.mrb[18].mxu0 }
 0x870   : > { %v3826_v25 = vpop.f32.mrb[19].mxu0 }
 0x871   : > { %v4560_v26 = vpop.f32.mrb[32].mxu1 }
 0x872   : > { %v3831_v27 = vpop.f32.mrb[33].mxu1 }
 0x873   : > { %v1606_v28 = vpop.f32.mrb[34].mxu1 }
 0x874   : > { %v3832_v30 = vpop.f32.mrb[35].mxu1 }
 0x877   : > { %v1664_v31 = vpop.f32.mrb[20].mxu0 }
 0x878   : > { %v3837_v34 = vpop.f32.mrb[21].mxu0  ;;  %v1720_v37 = vsel %vm1038_vm3, %v1664_v31, -inf }
 0x879   : > { %1721 = vmax.xlane.f32.xlu0 %v1720_v37  ;;  %v1667_v38 = vpop.f32.mrb[22].mxu0  ;;  %v1714_v39 = vpop.f32.mrb[36].mxu1 }
 0x87a   : > { %v3838_v40 = vpop.f32.mrb[23].mxu0  ;;  %v3843_v41 = vpop.f32.mrb[37].mxu1  ;;  %v1723_v42 = vsel %vm1038_vm3, %v1714_v39, -inf }
 0x87b   : > { %1724 = vmax.xlane.f32.xlu1 %v1723_v42  ;;  %v1717_v44 = vpop.f32.mrb[38].mxu1 }
 0x87c   : > { %v3844_v45 = vpop.f32.mrb[39].mxu1 }
 0x88c   : > { %1792 = vrot.lane.b32.xlu1 %v4461_v24, %s4192_s19 }
 0x890   : > { %1853 = vrot.lane.b32.xlu1 %v4419_v43, %s4193_s28 }
 0x894   : > { %1903 = vrot.lane.b32.xlu1 %v4424_v47, %s4193_s28 }
 0x898   : > { %1901 = vrot.lane.b32.xlu1 %v4435_v51, %s4193_s28 }
 0x906   : > { %v1722_v46 = vpop.xlane.xlu0 %1721 }
 0x907   : > { %v1726_v49 = vsub.f32 %v1664_v31, %v1722_v46 }
 0x908   : > { %v1725_v50 = vpop.xlane.xlu1 %1724 }
 0x909   : > { %v1728_v52 = vmul.f32 1.442695, %v1726_v49  ;;  %v1727_v53 = vsub.f32 %v1714_v39, %v1725_v50 }
 0x90b   : > { %4113 = vpow2.f32 %v1728_v52  ;;  %v1730_v54 = vmul.f32 1.442695, %v1727_v53 }
 0x90c   : > { %v1793_v55 = vpop.permute.xlu1 %1792 }
 0x90d   : > { %4115 = vpow2.f32 %v1730_v54  ;;  %v1798_v56 = vsel %vm1066_vm2, %v1793_v55, 0 }
 0x90e   : > { %3852 = vmatpush3.bf16.msra.mxu1 %v1798_v56 }
 0x90f   : > { %3863 = vmatprep.subr.bf16.mxu1 %v4188_v5 }
 0x910   : > { %v1854_v3 = vpop.permute.xlu1 %1853 }
 0x911   : > { %v1859_v11 = vsel %vm945_vm1, %v1854_v3, 0 }
 0x914   : > { %v1904_v10 = vpop.permute.xlu1 %1903 }
 0x915   : > { %v4114_v57 = vpop.eup %4113  ;;  %v1909_v13 = vsel %vm945_vm1, %v1904_v10, 0 }
 0x916   : > { %v1732_v59 = vsel %vm1038_vm3, %v4114_v57, 0.0 }
 0x917   : > { %v4116_v60 = vpop.eup %4115  ;;  %1733 = vadd.xlane.f32.xlu0 %v1732_v59 }
 0x918   : > { %v1735_v61 = vsel %vm1038_vm3, %v4116_v60, 0.0  ;;  %v1902_v15 = vpop.permute.xlu1 %1901 }
 0x91b   : > { %1736 = vadd.xlane.f32.xlu0 %v1735_v61 }
 0x931   : > { %1744 = vrot.lane.b32.xlu0 %v4442_v58, %s4192_s19 }
 0x935   : > { %1851 = vrot.lane.b32.xlu0 %v4426_v48, %s4193_s28 }
 0x9a4   : > { %v1734_v62 = vpop.xlane.xlu0 %1733 }
 0x9a5   : > { %4117 = vrcp.f32 %v1734_v62 }
 0x9a8   : > { %v1737_v63 = vpop.xlane.xlu0 %1736 }
 0x9a9   : > { %4119 = vrcp.f32 %v1737_v63 }
 0x9ac   : > { %v1745_v0 = vpop.permute.xlu0 %1744 }
 0x9ad   : > { %v1750_v1 = vsel %vm1066_vm2, %v1745_v0, 0 }
 0x9ae   : > { %3846 = vmatpush3.bf16.msra.mxu0 %v1750_v1 }
 0x9af   : > { %v4118_v2 = vpop.eup %4117  ;;  %3857 = vmatprep.subr.bf16.mxu0 %v4188_v5 }
 0x9b0   : > { %v1740_v6 = vmul.f32 %v4118_v2, %v4114_v57  ;;  %v1852_v14 = vpop.permute.xlu0 %1851 }
 0x9b2   : > { %v1742_v7 = vpack.c.bf16 %v1740_v6, %v1740_v6 }
 0x9b3   : > { %v4120_v8 = vpop.eup %4119 }
 0x9b4   : > { %v1741_v9 = vmul.f32 %v4120_v8, %v4116_v60  ;;  %3848 = vmatmul.mubr.msk.bf16.vlgmr.msra.gmra.mrb[24].mxu0 %vm1038_vm3, %v1742_v7 }
 0x9b5   : > { %3859 = vmatprep.mubr.msk.bf16.mxu0 %vm4189_vm0, %v4188_v5 }
 0x9b6   : > { %v1743_v12 = vpack.c.bf16 %v1741_v9, %v1741_v9 }
 0x9b7   : > { %3858 = vmatpush3.bf16.xpose.msra.mxu0 %v1859_v11 }
 0x9b8   : > { %3854 = vmatmul.mubr.msk.bf16.vlgmr.msra.gmra.mrb[40].mxu1 %vm1038_vm3, %v1743_v12  ;;  %3869 = vmatprep.subr.bf16.mxu0 %v4188_v5 }
 0x9b9   : > { %3864 = vmatpush3.bf16.xpose.msra.mxu1 %v1909_v13  ;;  %3865 = vmatprep.mubr.msk.bf16.mxu1 %vm4189_vm0, %v4188_v5 }
 0x9ba   : > { %3875 = vmatprep.subr.bf16.mxu1 %v4188_v5 }
 0x9be   : > { %3860 = vmatmul.mubr.msk.bf16.vlgmr.msra.gmra.mrb[28].mxu0 %vm945_vm1, %v1852_v14 }
 0x9bf   : > { %3871 = vmatprep.mubr.msk.bf16.mxu0 %vm4189_vm0, %v4188_v5 }
 0x9c0   : > { %3866 = vmatmul.mubr.msk.bf16.vlgmr.msra.gmra.mrb[44].mxu1 %vm945_vm1, %v1902_v15 }
 0x9c1   : > { %3877 = vmatprep.mubr.msk.bf16.mxu1 %vm4189_vm0, %v4188_v5 }
 0xa87   : > { %v4598_v16 = vpop.f32.mrb[24].mxu0 }
 0xa88   : > { %v3849_v17 = vpop.f32.mrb[25].mxu0 }
 0xa89   : > { %v1789_v18 = vpop.f32.mrb[26].mxu0 }
 0xa8a   : > { %v3850_v19 = vpop.f32.mrb[27].mxu0 }
 0xa8b   : > { %v4600_v20 = vpop.f32.mrb[40].mxu1 }
 0xa8c   : > { %v3855_v22 = vpop.f32.mrb[41].mxu1 }
 0xa8d   : > { %v1837_v23 = vpop.f32.mrb[42].mxu1 }
 0xa8e   : > { %v3856_v25 = vpop.f32.mrb[43].mxu1 }
 0xa91   : > { %v1895_v27 = vpop.f32.mrb[28].mxu0 }
 0xa92   : > { %v3861_v28 = vpop.f32.mrb[29].mxu0  ;;  %v1951_v30 = vsel %vm1038_vm3, %v1895_v27, -inf }
 0xa93   : > { %1952 = vmax.xlane.f32.xlu0 %v1951_v30  ;;  %v1898_v31 = vpop.f32.mrb[30].mxu0  ;;  %v1945_v34 = vpop.f32.mrb[44].mxu1 }
 0xa94   : > { %v3862_v37 = vpop.f32.mrb[31].mxu0  ;;  %v3867_v38 = vpop.f32.mrb[45].mxu1  ;;  %v1954_v39 = vsel %vm1038_vm3, %v1945_v34, -inf }
 0xa95   : > { %1955 = vmax.xlane.f32.xlu1 %v1954_v39  ;;  %v1948_v40 = vpop.f32.mrb[46].mxu1 }
 0xa96   : > { %v3868_v41 = vpop.f32.mrb[47].mxu1 }
 0xaa6   : > { %2023 = vrot.lane.b32.xlu1 %v4461_v24, %s4193_s28 }
 0xaaa   : > { %2084 = vrot.lane.b32.xlu1 %v4419_v43, %s4194_s15 }
 0xaae   : > { %2134 = vrot.lane.b32.xlu1 %v4424_v47, %s4194_s15 }
 0xab2   : > { %2132 = vrot.lane.b32.xlu1 %v4435_v51, %s4194_s15 }
 0xb20   : > { %v1953_v42 = vpop.xlane.xlu0 %1952 }
 0xb21   : > { %v1957_v44 = vsub.f32 %v1895_v27, %v1953_v42 }
 0xb22   : > { %v1956_v45 = vpop.xlane.xlu1 %1955 }
 0xb23   : > { %v1959_v46 = vmul.f32 1.442695, %v1957_v44  ;;  %v1958_v49 = vsub.f32 %v1945_v34, %v1956_v45 }
 0xb25   : > { %4121 = vpow2.f32 %v1959_v46  ;;  %v1961_v50 = vmul.f32 1.442695, %v1958_v49 }
 0xb26   : > { %v2024_v52 = vpop.permute.xlu1 %2023 }
 0xb27   : > { %4123 = vpow2.f32 %v1961_v50  ;;  %v2029_v53 = vsel %vm1066_vm2, %v2024_v52, 0 }
 0xb28   : > { %3876 = vmatpush3.bf16.msra.mxu1 %v2029_v53 }
 0xb29   : > { %3887 = vmatprep.subr.bf16.mxu1 %v4188_v5 }
 0xb2a   : > { %v2085_v0 = vpop.permute.xlu1 %2084 }
 0xb2b   : > { %v2090_v8 = vsel %vm945_vm1, %v2085_v0, 0 }
 0xb2e   : > { %v2135_v7 = vpop.permute.xlu1 %2134 }
 0xb2f   : > { %v4122_v54 = vpop.eup %4121  ;;  %v2140_v10 = vsel %vm945_vm1, %v2135_v7, 0 }
 0xb30   : > { %v1963_v55 = vsel %vm1038_vm3, %v4122_v54, 0.0 }
 0xb31   : > { %v4124_v56 = vpop.eup %4123  ;;  %1964 = vadd.xlane.f32.xlu0 %v1963_v55 }
 0xb32   : > { %v1966_v57 = vsel %vm1038_vm3, %v4124_v56, 0.0  ;;  %v2133_v12 = vpop.permute.xlu1 %2132 }
 0xb35   : > { %1967 = vadd.xlane.f32.xlu0 %v1966_v57 }
 0xb4b   : > { %1975 = vrot.lane.b32.xlu0 %v4442_v58, %s4193_s28 }
 0xb4f   : > { %2082 = vrot.lane.b32.xlu0 %v4426_v48, %s4194_s15 }
 0xbbe   : > { %v1965_v59 = vpop.xlane.xlu0 %1964 }
 0xbbf   : > { %4125 = vrcp.f32 %v1965_v59 }
 0xbc2   : > { %v1968_v60 = vpop.xlane.xlu0 %1967 }
 0xbc3   : > { %4127 = vrcp.f32 %v1968_v60 }
 0xbc6   : > { %v1976_v61 = vpop.permute.xlu0 %1975 }
 0xbc7   : > { %v1981_v62 = vsel %vm1066_vm2, %v1976_v61, 0 }
 0xbc8   : > { %3870 = vmatpush3.bf16.msra.mxu0 %v1981_v62 }
 0xbc9   : > { %v4126_v63 = vpop.eup %4125  ;;  %3881 = vmatprep.subr.bf16.mxu0 %v4188_v5 }
 0xbca   : > { %v1971_v1 = vmul.f32 %v4126_v63, %v4122_v54  ;;  %v2083_v11 = vpop.permute.xlu0 %2082 }
 0xbcc   : > { %v1973_v2 = vpack.c.bf16 %v1971_v1, %v1971_v1 }
 0xbcd   : > { %v4128_v3 = vpop.eup %4127 }
 0xbce   : > { %v1972_v6 = vmul.f32 %v4128_v3, %v4124_v56  ;;  %3872 = vmatmul.mubr.msk.bf16.vlgmr.msra.gmra.mrb[32].mxu0 %vm1038_vm3, %v1973_v2 }
 0xbcf   : > { %3883 = vmatprep.mubr.msk.bf16.mxu0 %vm4189_vm0, %v4188_v5 }
 0xbd0   : > { %v1974_v9 = vpack.c.bf16 %v1972_v6, %v1972_v6 }
 0xbd1   : > { %3882 = vmatpush3.bf16.xpose.msra.mxu0 %v2090_v8 }
 0xbd2   : > { %3878 = vmatmul.mubr.msk.bf16.vlgmr.msra.gmra.mrb[48].mxu1 %vm1038_vm3, %v1974_v9  ;;  %3893 = vmatprep.subr.bf16.mxu0 %v4188_v5 }
 0xbd3   : > { %3888 = vmatpush3.bf16.xpose.msra.mxu1 %v2140_v10  ;;  %3889 = vmatprep.mubr.msk.bf16.mxu1 %vm4189_vm0, %v4188_v5 }
 0xbd4   : > { %3899 = vmatprep.subr.bf16.mxu1 %v4188_v5 }
 0xbd8   : > { %3884 = vmatmul.mubr.msk.bf16.vlgmr.msra.gmra.mrb[36].mxu0 %vm945_vm1, %v2083_v11 }
 0xbd9   : > { %3895 = vmatprep.mubr.msk.bf16.mxu0 %vm4189_vm0, %v4188_v5 }
 0xbda   : > { %3890 = vmatmul.mubr.msk.bf16.vlgmr.msra.gmra.mrb[52].mxu1 %vm945_vm1, %v2133_v12 }
 0xbdb   : > { %3901 = vmatprep.mubr.msk.bf16.mxu1 %vm4189_vm0, %v4188_v5 }
 0xca1   : > { %v4638_v13 = vpop.f32.mrb[32].mxu0 }
 0xca2   : > { %v3873_v14 = vpop.f32.mrb[33].mxu0 }
 0xca3   : > { %v2020_v15 = vpop.f32.mrb[34].mxu0 }
 0xca4   : > { %v3874_v17 = vpop.f32.mrb[35].mxu0 }
 0xca5   : > { %v4640_v18 = vpop.f32.mrb[48].mxu1 }
 0xca6   : > { %v3879_v19 = vpop.f32.mrb[49].mxu1 }
 0xca7   : > { %v2068_v22 = vpop.f32.mrb[50].mxu1 }
 0xca8   : > { %v3880_v23 = vpop.f32.mrb[51].mxu1 }
 0xcab   : > { %v2126_v25 = vpop.f32.mrb[36].mxu0 }
 0xcac   : > { %v3885_v27 = vpop.f32.mrb[37].mxu0  ;;  %v2182_v28 = vsel %vm1038_vm3, %v2126_v25, -inf }
 0xcad   : > { %2183 = vmax.xlane.f32.xlu0 %v2182_v28  ;;  %v2129_v30 = vpop.f32.mrb[38].mxu0  ;;  %v2176_v31 = vpop.f32.mrb[52].mxu1 }
 0xcae   : > { %v3886_v34 = vpop.f32.mrb[39].mxu0  ;;  %v3891_v37 = vpop.f32.mrb[53].mxu1  ;;  %v2185_v38 = vsel %vm1038_vm3, %v2176_v31, -inf }
 0xcaf   : > { %2186 = vmax.xlane.f32.xlu1 %v2185_v38  ;;  %v2179_v39 = vpop.f32.mrb[54].mxu1 }
 0xcb0   : > { %v3892_v40 = vpop.f32.mrb[55].mxu1 }
 0xcc0   : > { %2254 = vrot.lane.b32.xlu1 %v4461_v24, %s4194_s15 }
 0xcc4   : > { %2315 = vrot.lane.b32.xlu1 %v4419_v43, %s4195_s13 }
 0xcc8   : > { %2365 = vrot.lane.b32.xlu1 %v4424_v47, %s4195_s13 }
 0xccc   : > { %2363 = vrot.lane.b32.xlu1 %v4435_v51, %s4195_s13 }
 0xd3a   : > { %v2184_v41 = vpop.xlane.xlu0 %2183 }
 0xd3b   : > { %v2188_v42 = vsub.f32 %v2126_v25, %v2184_v41 }
 0xd3c   : > { %v2187_v44 = vpop.xlane.xlu1 %2186 }
 0xd3d   : > { %v2190_v45 = vmul.f32 1.442695, %v2188_v42  ;;  %v2189_v46 = vsub.f32 %v2176_v31, %v2187_v44 }
 0xd3f   : > { %4129 = vpow2.f32 %v2190_v45  ;;  %v2192_v49 = vmul.f32 1.442695, %v2189_v46 }
 0xd40   : > { %v2255_v50 = vpop.permute.xlu1 %2254 }
 0xd41   : > { %4131 = vpow2.f32 %v2192_v49  ;;  %v2260_v52 = vsel %vm1066_vm2, %v2255_v50, 0 }
 0xd42   : > { %3900 = vmatpush3.bf16.msra.mxu1 %v2260_v52 }
 0xd43   : > { %3911 = vmatprep.subr.bf16.mxu1 %v4188_v5 }
 0xd44   : > { %v2316_v63 = vpop.permute.xlu1 %2315 }
 0xd45   : > { %v2321_v7 = vsel %vm945_vm1, %v2316_v63, 0 }
 0xd48   : > { %v2366_v6 = vpop.permute.xlu1 %2365 }
 0xd49   : > { %v4130_v53 = vpop.eup %4129  ;;  %v2371_v9 = vsel %vm945_vm1, %v2366_v6, 0 }
 0xd4a   : > { %v2194_v54 = vsel %vm1038_vm3, %v4130_v53, 0.0 }
 0xd4b   : > { %v4132_v55 = vpop.eup %4131  ;;  %2195 = vadd.xlane.f32.xlu0 %v2194_v54 }
 0xd4c   : > { %v2197_v56 = vsel %vm1038_vm3, %v4132_v55, 0.0  ;;  %v2364_v11 = vpop.permute.xlu1 %2363 }
 0xd4f   : > { %2198 = vadd.xlane.f32.xlu0 %v2197_v56 }
 0xd65   : > { %2206 = vrot.lane.b32.xlu0 %v4442_v58, %s4194_s15 }
 0xd69   : > { %2313 = vrot.lane.b32.xlu0 %v4426_v48, %s4195_s13 }
 0xdd8   : > { %v2196_v57 = vpop.xlane.xlu0 %2195 }
 0xdd9   : > { %4133 = vrcp.f32 %v2196_v57 }
 0xddc   : > { %v2199_v59 = vpop.xlane.xlu0 %2198 }
 0xddd   : > { %4135 = vrcp.f32 %v2199_v59 }
 0xde0   : > { %v2207_v60 = vpop.permute.xlu0 %2206 }
 0xde1   : > { %v2212_v61 = vsel %vm1066_vm2, %v2207_v60, 0 }
 0xde2   : > { %3894 = vmatpush3.bf16.msra.mxu0 %v2212_v61 }
 0xde3   : > { %v4134_v62 = vpop.eup %4133  ;;  %3905 = vmatprep.subr.bf16.mxu0 %v4188_v5 }
 0xde4   : > { %v2202_v0 = vmul.f32 %v4134_v62, %v4130_v53  ;;  %v2314_v10 = vpop.permute.xlu0 %2313 }
 0xde6   : > { %v2204_v1 = vpack.c.bf16 %v2202_v0, %v2202_v0 }
 0xde7   : > { %v4136_v2 = vpop.eup %4135 }
 0xde8   : > { %v2203_v3 = vmul.f32 %v4136_v2, %v4132_v55  ;;  %3896 = vmatmul.mubr.msk.bf16.vlgmr.msra.gmra.mrb[40].mxu0 %vm1038_vm3, %v2204_v1 }
 0xde9   : > { %3907 = vmatprep.mubr.msk.bf16.mxu0 %vm4189_vm0, %v4188_v5 }
 0xdea   : > { %v2205_v8 = vpack.c.bf16 %v2203_v3, %v2203_v3 }
 0xdeb   : > { %3906 = vmatpush3.bf16.xpose.msra.mxu0 %v2321_v7 }
 0xdec   : > { %3902 = vmatmul.mubr.msk.bf16.vlgmr.msra.gmra.mrb[56].mxu1 %vm1038_vm3, %v2205_v8  ;;  %3917 = vmatprep.subr.bf16.mxu0 %v4188_v5 }
 0xded   : > { %3912 = vmatpush3.bf16.xpose.msra.mxu1 %v2371_v9  ;;  %3913 = vmatprep.mubr.msk.bf16.mxu1 %vm4189_vm0, %v4188_v5 }
 0xdee   : > { %3923 = vmatprep.subr.bf16.mxu1 %v4188_v5 }
 0xdf2   : > { %3908 = vmatmul.mubr.msk.bf16.vlgmr.msra.gmra.mrb[44].mxu0 %vm945_vm1, %v2314_v10 }
 0xdf3   : > { %3919 = vmatprep.mubr.msk.bf16.mxu0 %vm4189_vm0, %v4188_v5 }
 0xdf4   : > { %3914 = vmatmul.mubr.msk.bf16.vlgmr.msra.gmra.mrb[60].mxu1 %vm945_vm1, %v2364_v11 }
 0xdf5   : > { %3925 = vmatprep.mubr.msk.bf16.mxu1 %vm4189_vm0, %v4188_v5 }
 0xebb   : > { %v4678_v12 = vpop.f32.mrb[40].mxu0 }
 0xebc   : > { %v3897_v14 = vpop.f32.mrb[41].mxu0 }
 0xebd   : > { %v2251_v15 = vpop.f32.mrb[42].mxu0 }
 0xebe   : > { %v3898_v17 = vpop.f32.mrb[43].mxu0 }
 0xebf   : > { %v4680_v19 = vpop.f32.mrb[56].mxu1 }
 0xec0   : > { %v3903_v22 = vpop.f32.mrb[57].mxu1 }
 0xec1   : > { %v2299_v23 = vpop.f32.mrb[58].mxu1 }
 0xec2   : > { %v3904_v25 = vpop.f32.mrb[59].mxu1 }
 0xec5   : > { %v2357_v27 = vpop.f32.mrb[44].mxu0 }
 0xec6   : > { %v3909_v28 = vpop.f32.mrb[45].mxu0  ;;  %v2413_v30 = vsel %vm1038_vm3, %v2357_v27, -inf }
 0xec7   : > { %2414 = vmax.xlane.f32.xlu0 %v2413_v30  ;;  %v2360_v31 = vpop.f32.mrb[46].mxu0  ;;  %v2407_v34 = vpop.f32.mrb[60].mxu1 }
 0xec8   : > { %v3910_v37 = vpop.f32.mrb[47].mxu0  ;;  %v3915_v38 = vpop.f32.mrb[61].mxu1  ;;  %v2416_v39 = vsel %vm1038_vm3, %v2407_v34, -inf }
 0xec9   : > { %2417 = vmax.xlane.f32.xlu1 %v2416_v39  ;;  %v2410_v40 = vpop.f32.mrb[62].mxu1 }
 0xeca   : > { %v3916_v41 = vpop.f32.mrb[63].mxu1 }
 0xeda   : > { %2485 = vrot.lane.b32.xlu1 %v4461_v24, %s4195_s13 }
 0xede   : > { %2546 = vrot.lane.b32.xlu1 %v4419_v43, %s4196_s14 }
 0xee2   : > { %2596 = vrot.lane.b32.xlu1 %v4424_v47, %s4196_s14 }
 0xee6   : > { %2594 = vrot.lane.b32.xlu1 %v4435_v51, %s4196_s14 }
 0xf54   : > { %v2415_v42 = vpop.xlane.xlu0 %2414 }
 0xf55   : > { %v2419_v44 = vsub.f32 %v2357_v27, %v2415_v42 }
 0xf56   : > { %v2418_v45 = vpop.xlane.xlu1 %2417 }
 0xf57   : > { %v2421_v46 = vmul.f32 1.442695, %v2419_v44  ;;  %v2420_v49 = vsub.f32 %v2407_v34, %v2418_v45 }
 0xf59   : > { %4137 = vpow2.f32 %v2421_v46  ;;  %v2423_v50 = vmul.f32 1.442695, %v2420_v49 }
 0xf5a   : > { %v2486_v52 = vpop.permute.xlu1 %2485 }
 0xf5b   : > { %4139 = vpow2.f32 %v2423_v50  ;;  %v2491_v53 = vsel %vm1066_vm2, %v2486_v52, 0 }
 0xf5c   : > { %3924 = vmatpush3.bf16.msra.mxu1 %v2491_v53 }
 0xf5d   : > { %3935 = vmatprep.subr.bf16.mxu1 %v4188_v5 }
 0xf5e   : > { %v2547_v61 = vpop.permute.xlu1 %2546 }
 0xf62   : > { %v2597_v2 = vpop.permute.xlu1 %2596 }
 0xf63   : > { %v4138_v43 = vpop.eup %4137  ;;  %v2602_v6 = vsel %vm945_vm1, %v2597_v2, 0  ;;  %v4042_v2 = vld [vmem:[%s4297_s18 + $0x8] sm:$0xff]  }
 0xf64   : > { %v2425_v47 = vsel %vm1038_vm3, %v4138_v43, 0.0 }
 0xf65   : > { %v4140_v54 = vpop.eup %4139  ;;  %2426 = vadd.xlane.f32.xlu0 %v2425_v47 }
 0xf66   : > { %v2428_v51 = vsel %vm1038_vm3, %v4140_v54, 0.0  ;;  %v2595_v8 = vpop.permute.xlu1 %2594 }
 0xf69   : > { %2429 = vadd.xlane.f32.xlu0 %v2428_v51 }
 0xf7f   : > { %2437 = vrot.lane.b32.xlu0 %v4442_v58, %s4195_s13 }
 0xf83   : > { %2544 = vrot.lane.b32.xlu0 %v4426_v48, %s4196_s14  ;;  %v2552_v48 = vsel %vm945_vm1, %v2547_v61, 0 }
 0xff2   : > { %v2427_v55 = vpop.xlane.xlu0 %2426 }
 0xff3   : > { %4141 = vrcp.f32 %v2427_v55 }
 0xff6   : > { %v2430_v56 = vpop.xlane.xlu0 %2429 }
 0xff7   : > { %4143 = vrcp.f32 %v2430_v56 }
 0xffa   : > { %v2438_v57 = vpop.permute.xlu0 %2437 }
 0xffb   : > { %v2443_v59 = vsel %vm1066_vm2, %v2438_v57, 0 }
 0xffc   : > { %3918 = vmatpush3.bf16.msra.mxu0 %v2443_v59 }
 0xffd   : > { %v4142_v60 = vpop.eup %4141  ;;  %3929 = vmatprep.subr.bf16.mxu0 %v4188_v5 }
 0xffe   : > { %v2433_v62 = vmul.f32 %v4142_v60, %v4138_v43  ;;  %v2545_v7 = vpop.permute.xlu0 %2544 }
0x1000   : > { %v2435_v63 = vpack.c.bf16 %v2433_v62, %v2433_v62 }
0x1001   : > { %v4144_v0 = vpop.eup %4143 }
0x1002   : > { %v2434_v1 = vmul.f32 %v4144_v0, %v4140_v54  ;;  %3920 = vmatmul.mubr.msk.bf16.vlgmr.msra.gmra.mrb[48].mxu0 %vm1038_vm3, %v2435_v63 }
0x1003   : > { %3931 = vmatprep.mubr.msk.bf16.mxu0 %vm4189_vm0, %v4188_v5 }
0x1004   : > { %v2436_v3 = vpack.c.bf16 %v2434_v1, %v2434_v1  ;;  %v4041_v1 = vld [vmem:[%s4297_s18] sm:$0xff]  }
0x1005   : > { %3930 = vmatpush3.bf16.xpose.msra.mxu0 %v2552_v48  ;;  %v4043_v48 = vld [vmem:[%s4297_s18 + $0x10] sm:$0xff]  }
0x1006   : > { %3926 = vmatmul.mubr.msk.bf16.vlgmr.msra.gmra.mrb[64].mxu1 %vm1038_vm3, %v2436_v3  ;;  %3941 = vmatprep.subr.bf16.mxu0 %v4188_v5  ;;  %v4045_v3 = vld [vmem:[%s4297_s18 + $0x20] sm:$0xff]  }
0x1007   : > { %3936 = vmatpush3.bf16.xpose.msra.mxu1 %v2602_v6  ;;  %3937 = vmatprep.mubr.msk.bf16.mxu1 %vm4189_vm0, %v4188_v5  ;;  %v4046_v6 = vld [vmem:[%s4297_s18 + $0x28] sm:$0xff]  }
0x1008   : > { %3947 = vmatprep.subr.bf16.mxu1 %v4188_v5 }
0x100c   : > { %3932 = vmatmul.mubr.msk.bf16.vlgmr.msra.gmra.mrb[52].mxu0 %vm945_vm1, %v2545_v7  ;;  %v4047_v7 = vld [vmem:[%s4297_s18 + $0x30] sm:$0xff]  }
0x100d   : > { %3943 = vmatprep.mubr.msk.bf16.mxu0 %vm4189_vm0, %v4188_v5 }
0x100e   : > { %3938 = vmatmul.mubr.msk.bf16.vlgmr.msra.gmra.mrb[68].mxu1 %vm945_vm1, %v2595_v8  ;;  %v4048_v8 = vld [vmem:[%s4297_s18 + $0x38] sm:$0xff]  }
0x100f   : > { %3949 = vmatprep.mubr.msk.bf16.mxu1 %vm4189_vm0, %v4188_v5 }
0x10d5   : > { %v4718_v9 = vpop.f32.mrb[48].mxu0 }
0x10d6   : > { %v3921_v10 = vpop.f32.mrb[49].mxu0 }
0x10d7   : > { %v2482_v11 = vpop.f32.mrb[50].mxu0 }
0x10d8   : > { %v3922_v14 = vpop.f32.mrb[51].mxu0 }
0x10d9   : > { %v2527_v15 = vpop.f32.mrb[64].mxu1 }
0x10da   : > { %v3927_v17 = vpop.f32.mrb[65].mxu1 }
0x10db   : > { %v2530_v22 = vpop.f32.mrb[66].mxu1 }
0x10dc   : > { %v3928_v23 = vpop.f32.mrb[67].mxu1 }
0x10df   : > { %v2588_v25 = vpop.f32.mrb[52].mxu0 }
0x10e0   : > { %v3933_v27 = vpop.f32.mrb[53].mxu0  ;;  %v2644_v28 = vsel %vm1038_vm3, %v2588_v25, -inf }
0x10e1   : > { %2645 = vmax.xlane.f32.xlu0 %v2644_v28  ;;  %v2591_v30 = vpop.f32.mrb[54].mxu0  ;;  %v2638_v31 = vpop.f32.mrb[68].mxu1 }
0x10e2   : > { %v3934_v34 = vpop.f32.mrb[55].mxu0  ;;  %v3939_v37 = vpop.f32.mrb[69].mxu1  ;;  %v2647_v38 = vsel %vm1038_vm3, %v2638_v31, -inf }
0x10e3   : > { %2648 = vmax.xlane.f32.xlu1 %v2647_v38  ;;  %v2641_v39 = vpop.f32.mrb[70].mxu1 }
0x10e4   : > { %v3940_v40 = vpop.f32.mrb[71].mxu1 }
0x10f4   : > { %2716 = vrot.lane.b32.xlu1 %v4461_v24, %s4196_s14 }
0x10f8   : > { %1380 = vrot.lane.b32.xlu1 %v4518_v29, %s4196_s14 }
0x10fc   : > { %1382 = vrot.lane.b32.xlu1 %v4520_v35, %s4196_s14 }
0x1100   : > { %1613 = vrot.lane.b32.xlu1 %v4560_v26, %s4195_s13 }
0x1104   : > { %1844 = vrot.lane.b32.xlu1 %v4600_v20, %s4194_s15 }
0x1108   : > { %2075 = vrot.lane.b32.xlu1 %v4640_v18, %s4193_s28 }
0x110c   : > { %2306 = vrot.lane.b32.xlu1 %v4680_v19, %s4192_s19 }
0x1110   : > { %2537 = vrot.lane.b32.xlu1 %v2527_v15, %s4191_s21 }
0x116e   : > { %v2646_v24 = vpop.xlane.xlu0 %2645 }
0x116f   : > { %v2650_v41 = vsub.f32 %v2588_v25, %v2646_v24 }
0x1170   : > { %v2649_v29 = vpop.xlane.xlu1 %2648 }
0x1171   : > { %v2652_v42 = vmul.f32 1.442695, %v2650_v41  ;;  %v2651_v44 = vsub.f32 %v2638_v31, %v2649_v29  ;;  %v3578_v31 = vld [vmem:[%s4914_s16] ss:$0 sm:$0xff] }
0x1172   : > { %v4161_v41 = vld [vmem:[%s4913_s20] sm:$0xff] }
0x1173   : > { %4145 = vpow2.f32 %v2652_v42  ;;  %v2654_v35 = vmul.f32 1.442695, %v2651_v44  ;;  %v4162_v42 = vld [vmem:[%s4913_s20 + $0x8] sm:$0xff] }
0x1174   : > { %v2717_v45 = vpop.permute.xlu1 %2716 }
0x1175   : > { %4147 = vpow2.f32 %v2654_v35  ;;  %v2722_v26 = vsel %vm1066_vm2, %v2717_v45, 0  ;;  %v4049_v35 = vld [vmem:[%s4325_s1] ss:$8 sps:$4 sm:$0xff]   ;;  %v4051_v45 = vld [vmem:[%s4325_s1 + $0x4] ss:$8 sps:$4 sm:$0xff]  }
0x1176   : > { %3948 = vmatpush3.bf16.msra.mxu1 %v2722_v26  ;;  %v4054_v26 = vld [vmem:[%s4325_s1 + $0x14] ss:$8 sps:$4 sm:$0xff]  }
0x1177   : > { %3042 = vmatprep.subr.bf16.mxu1 %v4051_v45 }
0x1178   : > { %v1381_v20 = vpop.permute.xlu1 %1380 }
0x1179   : > { %1387 = vst.msk [vmem:[#allocation2] sm:$0xff] %vm1386_vm4, %v1381_v20  ;;  %v4052_v20 = vld [vmem:[%s4325_s1 + $0x10] ss:$8 sps:$4 sm:$0xff]  }
0x117c   : > { %v1383_v18 = vpop.permute.xlu1 %1382 }
0x117d   : > { %v4146_v46 = vpop.eup %4145  ;;  %1388 = vst.msk [vmem:[#allocation2 + $0x8] sm:$0xff] %vm1386_vm4, %v1383_v18 }
0x117e   : > { %v2656_v19 = vsel %vm1038_vm3, %v4146_v46, 0.0 }
0x117f   : > { %v4148_v49 = vpop.eup %4147  ;;  %2657 = vadd.xlane.f32.xlu0 %v2656_v19 }
0x1180   : > { %v1614_v50 = vpop.permute.xlu1 %1613  ;;  %v2659_v52 = vsel %vm1038_vm3, %v4148_v49, 0.0 }
0x1181   : > { %1619 = vst.msk [vmem:[#allocation2 + $0x8] sm:$0xff] %vm1617_vm5, %v1614_v50 }
0x1183   : > { %2660 = vadd.xlane.f32.xlu0 %v2659_v52 }
0x1184   : > { %v1845_v53 = vpop.permute.xlu1 %1844 }
0x1185   : > { %1850 = vst.msk [vmem:[#allocation2 + $0x8] sm:$0xff] %vm1848_vm6, %v1845_v53 }
0x1188   : > { %v2076_v43 = vpop.permute.xlu1 %2075 }
0x1189   : > { %2081 = vst.msk [vmem:[#allocation2 + $0x8] sm:$0xff] %vm2079_vm7, %v2076_v43 }
0x118c   : > { %v2307_v47 = vpop.permute.xlu1 %2306 }
0x118d   : > { %2312 = vst.msk [vmem:[#allocation2 + $0x8] sm:$0xff] %vm2310_vm8, %v2307_v47  ;;  %v4057_v47 = vld [vmem:[%s4325_s1 + $0x24] ss:$8 sps:$4 sm:$0xff]  }
0x1190   : > { %v2538_v54 = vpop.permute.xlu1 %2537 }
0x1191   : > { %2543 = vst.msk [vmem:[#allocation2 + $0x8] sm:$0xff] %vm2541_vm9, %v2538_v54  ;;  %v4055_v54 = vld [vmem:[%s4325_s1 + $0x20] ss:$8 sps:$4 sm:$0xff]  }
0x1199   : > { %2668 = vrot.lane.b32.xlu0 %v4442_v58, %s4196_s14 }
0x119d   : > { %1611 = vrot.lane.b32.xlu0 %v4558_v21, %s4195_s13 }
0x11a1   : > { %1842 = vrot.lane.b32.xlu0 %v4598_v16, %s4194_s15  ;;  %s4916_s15 = scalar_lea.vmem %s4885_s6, %s4289_s29 }
0x11a5   : > { %2073 = vrot.lane.b32.xlu0 %v4638_v13, %s4193_s28 }
0x11a9   : > { %2304 = vrot.lane.b32.xlu0 %v4678_v12, %s4192_s19 }
0x11ad   : > { %2535 = vrot.lane.b32.xlu0 %v4718_v9, %s4191_s21  ;;  %s4915_s21 = scalar_lea.vmem %s4884_s5, %s4289_s29 }
0x120c   : > { %v2658_v51 = vpop.xlane.xlu0 %2657 }
0x120d   : > { %4149 = vrcp.f32 %v2658_v51  ;;  %v4060_v51 = vld [vmem:[%s4325_s1 + $0x34] ss:$8 sps:$4 sm:$0xff]  }
0x1210   : > { %v2661_v55 = vpop.xlane.xlu0 %2660 }
0x1211   : > { %4151 = vrcp.f32 %v2661_v55  ;;  %v4058_v55 = vld [vmem:[%s4325_s1 + $0x30] ss:$8 sps:$4 sm:$0xff]  }
0x1214   : > { %v2669_v58 = vpop.permute.xlu0 %2668 }
0x1215   : > { %v2674_v56 = vsel %vm1066_vm2, %v2669_v58, 0  ;;  %v4063_v58 = vld [vmem:[%s4325_s1 + $0x44] ss:$8 sps:$4 sm:$0xff]  }
0x1216   : > { %3942 = vmatpush3.bf16.msra.mxu0 %v2674_v56  ;;  %v4061_v56 = vld [vmem:[%s4325_s1 + $0x40] ss:$8 sps:$4 sm:$0xff]  }
0x1217   : > { %v4150_v21 = vpop.eup %4149  ;;  %3953 = vmatprep.subr.bf16.mxu0 %v4188_v5 }
0x1218   : > { %v2664_v16 = vmul.f32 %v4150_v21, %v4146_v46  ;;  %v1612_v57 = vpop.permute.xlu0 %1611  ;;  %v4066_v21 = vld [vmem:[%s4325_s1 + $0x54] ss:$8 sps:$4 sm:$0xff]  }
0x1219   : > { %1618 = vst.msk [vmem:[#allocation2] sm:$0xff] %vm1617_vm5, %v1612_v57  ;;  %v4069_v57 = vld [vmem:[%s4325_s1 + $0x64] ss:$8 sps:$4 sm:$0xff]  }
0x121a   : > { %v2666_v13 = vpack.c.bf16 %v2664_v16, %v2664_v16  ;;  %v4064_v16 = vld [vmem:[%s4325_s1 + $0x50] ss:$8 sps:$4 sm:$0xff]  }
0x121b   : > { %v4152_v12 = vpop.eup %4151 }
0x121c   : > { %v2665_v59 = vmul.f32 %v4152_v12, %v4148_v49  ;;  %3944 = vmatmul.mubr.msk.bf16.vlgmr.msra.gmra.mrb[56].mxu0 %vm1038_vm3, %v2666_v13  ;;  %v1843_v60 = vpop.permute.xlu0 %1842  ;;  %v4067_v13 = vld [vmem:[%s4325_s1 + $0x60] ss:$8 sps:$4 sm:$0xff]   ;;  %v4072_v12 = vld [vmem:[%s4325_s1 + $0x74] ss:$8 sps:$4 sm:$0xff]  }
0x121d   : > { %1849 = vst.msk [vmem:[#allocation2] sm:$0xff] %vm1848_vm6, %v1843_v60  ;;  %3969 = vmatprep.mubr.msk.bf16.mxu0 %vm4189_vm0, %v4188_v5  ;;  %3954 = vmatpush3.bf16.msra.mxu0 %v4041_v1  ;;  %v4073_v60 = vld [vmem:[%s4336_s0 + $0x40] sm:$0xff]   ;;  %v4078_v1 = vld [vmem:[%s4336_s0 + $0x10] sm:$0xff]  }
0x121e   : > { %v2667_v61 = vpack.c.bf16 %v2665_v59, %v2665_v59  ;;  %3955 = vmatprep.subr.bf16.mxu0 %v4188_v5  ;;  %v4070_v59 = vld [vmem:[%s4325_s1 + $0x70] ss:$8 sps:$4 sm:$0xff]  }
0x1220   : > { %v2074_v62 = vpop.permute.xlu0 %2073  ;;  %3950 = vmatmul.mubr.msk.bf16.vlgmr.msra.gmra.mrb[72].mxu1 %vm1038_vm3, %v2667_v61  ;;  %v4074_v61 = vld [vmem:[%s4336_s0] sm:$0xff]  }
0x1221   : > { %2080 = vst.msk [vmem:[#allocation2] sm:$0xff] %vm2079_vm7, %v2074_v62  ;;  %3074 = vmatprep.mubr.bf16.mxu1 %v4187_v4  ;;  %3956 = vmatpush3.bf16.msra.mxu0 %v4042_v2  ;;  %v4044_v4 = vld [vmem:[%s4297_s18 + $0x18] sm:$0xff]   ;;  %v4075_v62 = vld [vmem:[%s4336_s0 + $0x48] sm:$0xff]  }
0x1222   : > { %3957 = vmatprep.subr.bf16.mxu0 %v4188_v5  ;;  %3043 = vmatpush1.bf16.msra.mxu1 %v4049_v35  ;;  %v4079_v2 = vld [vmem:[%s4336_s0 + $0x58] sm:$0xff]  }
0x1223   : > { %3044 = vmatprep.subr.bf16.mxu1 %v4054_v26 }
0x1224   : > { %v2305_v63 = vpop.permute.xlu0 %2304 }
0x1225   : > { %2311 = vst.msk [vmem:[#allocation2] sm:$0xff] %vm2310_vm8, %v2305_v63  ;;  %3958 = vmatpush3.bf16.msra.mxu0 %v4043_v48  ;;  %v4076_v63 = vld [vmem:[%s4336_s0 + $0x8] sm:$0xff]   ;;  %v4080_v48 = vld [vmem:[%s4336_s0 + $0x18] sm:$0xff]  }
0x1226   : > { %3959 = vmatprep.subr.bf16.mxu0 %v4188_v5  ;;  %3045 = vmatpush1.bf16.msra.mxu1 %v4052_v20 }
0x1227   : > { %3046 = vmatprep.subr.bf16.mxu1 %v4057_v47 }
0x1228   : > { %v2536_v0 = vpop.permute.xlu0 %2535 }
0x1229   : > { %2542 = vst.msk [vmem:[#allocation2] sm:$0xff] %vm2541_vm9, %v2536_v0  ;;  %3960 = vmatpush3.bf16.msra.mxu0 %v4044_v4  ;;  %v4077_v0 = vld [vmem:[%s4336_s0 + $0x50] sm:$0xff]   ;;  %v4081_v4 = vld [vmem:[%s4336_s0 + $0x60] sm:$0xff]  }
0x122a   : > { %3961 = vmatprep.subr.bf16.mxu0 %v4188_v5  ;;  %3047 = vmatpush1.bf16.msra.mxu1 %v4055_v54 }
0x122b   : > { %3048 = vmatprep.subr.bf16.mxu1 %v4060_v51 }
0x122d   : > { %3962 = vmatpush3.bf16.msra.mxu0 %v4045_v3  ;;  %v4082_v3 = vld [vmem:[%s4336_s0 + $0x20] sm:$0xff]  }
0x122e   : > { %3963 = vmatprep.subr.bf16.mxu0 %v4188_v5  ;;  %3049 = vmatpush1.bf16.msra.mxu1 %v4058_v55 }
0x122f   : > { %3050 = vmatprep.subr.bf16.mxu1 %v4063_v58 }
0x1231   : > { %3964 = vmatpush3.bf16.msra.mxu0 %v4046_v6  ;;  %v4083_v6 = vld [vmem:[%s4336_s0 + $0x68] sm:$0xff]  }
0x1232   : > { %3965 = vmatprep.subr.bf16.mxu0 %v4188_v5  ;;  %3051 = vmatpush1.bf16.msra.mxu1 %v4061_v56 }
0x1233   : > { %3052 = vmatprep.subr.bf16.mxu1 %v4066_v21 }
0x1235   : > { %3966 = vmatpush3.bf16.msra.mxu0 %v4047_v7 }
0x1236   : > { %3967 = vmatprep.subr.bf16.mxu0 %v4188_v5  ;;  %3053 = vmatpush1.bf16.msra.mxu1 %v4064_v16 }
0x1237   : > { %3054 = vmatprep.subr.bf16.mxu1 %v4069_v57 }
0x1239   : > { %3968 = vmatpush3.bf16.msra.mxu0 %v4048_v8 }
0x123a   : > { %3055 = vmatpush1.bf16.msra.mxu1 %v4067_v13  ;;  %3719 = vmatprep.subr.bf16.mxu0 %v4073_v60 }
0x123b   : > { %3056 = vmatprep.subr.bf16.mxu1 %v4072_v12 }
0x123e   : > { %3057 = vmatpush1.bf16.msra.mxu1 %v4070_v59 }
0x12ef   : > { %v2710_v9 = vpop.f32.mrb[56].mxu0 }
0x12f0   : > { %2766 = vrot.lane.b32.xlu0 %v2710_v9, %s4190_s27  ;;  %v3945_v10 = vpop.f32.mrb[57].mxu0 }
0x12f1   : > { %v2713_v11 = vpop.f32.mrb[58].mxu0 }
0x12f2   : > { %v3946_v14 = vpop.f32.mrb[59].mxu0 }
0x12f3   : > { %v2758_v15 = vpop.f32.mrb[72].mxu1 }
0x12f4   : > { %2768 = vrot.lane.b32.xlu1 %v2758_v15, %s4190_s27  ;;  %v3951_v17 = vpop.f32.mrb[73].mxu1 }
0x12f5   : > { %v2761_v22 = vpop.f32.mrb[74].mxu1 }
0x12f6   : > { %v3952_v23 = vpop.f32.mrb[75].mxu1  ;;  %v3587_v22 = vld [vmem:[%s4915_s21] ss:$0 sm:$0xff] }
0x1362   : > { %v2767_v25 = vpop.permute.xlu0 %2766 }
0x1363   : > { %2773 = vst.msk [vmem:[#allocation2] sm:$0xff] %vm2772_vm10, %v2767_v25 }
0x1366   : > { %v2769_v27 = vpop.permute.xlu1 %2768 }
0x1367   : > { %2774 = vst.msk [vmem:[#allocation2 + $0x8] sm:$0xff] %vm2772_vm10, %v2769_v27 }
0x136a   : > { %v2775_v5 = vld [vmem:[#allocation2] sm:$0xff] }
0x136e   : > { %v2776_v28 = vld [vmem:[#allocation2 + $0x8] sm:$0xff] }
0x136f   : > { %v2777_v30 = vpack.c.bf16 %v2776_v28, %v2775_v5  ;;  %v3588_v5 = vld [vmem:[%s4916_s15] ss:$0 sm:$0xff] }
0x1371   : > { %3970 = vmatmul.mubr.bf16.vlgmr.msra.gmra.mrb[60].mxu0 %v2777_v30 }
0x1372   : > { %3720 = vmatpush3.bf16.msra.mxu0 %v4074_v61 }
0x1373   : > { %3721 = vmatprep.subr.bf16.mxu0 %v4075_v62 }
0x1376   : > { %3722 = vmatpush3.bf16.msra.mxu0 %v4076_v63 }
0x1377   : > { %3723 = vmatprep.subr.bf16.mxu0 %v4077_v0 }
0x137a   : > { %3724 = vmatpush3.bf16.msra.mxu0 %v4078_v1 }
0x137b   : > { %3725 = vmatprep.subr.bf16.mxu0 %v4079_v2 }
0x137e   : > { %3726 = vmatpush3.bf16.msra.mxu0 %v4080_v48 }
0x137f   : > { %3727 = vmatprep.subr.bf16.mxu0 %v4081_v4 }
0x1382   : > { %3728 = vmatpush3.bf16.msra.mxu0 %v4082_v3 }
0x1383   : > { %3729 = vmatprep.subr.bf16.mxu0 %v4083_v6 }
0x1444   : > { %v2883_v34 = vpop.f32.mrb[60].mxu0 }
0x1445   : > { %v2884_v37 = vadd.f32 %v3578_v31, %v2883_v34  ;;  %v3971_v38 = vpop.f32.mrb[61].mxu0 }
0x1446   : > { %v2886_v39 = vpop.f32.mrb[62].mxu0  ;;  %v4085_v38 = vld [vmem:[%s4336_s0 + $0x70] sm:$0xff]  }
0x1447   : > { %v2887_v40 = vadd.f32 %v3578_v31, %v2886_v39  ;;  %v3972_v24 = vpop.f32.mrb[63].mxu0  ;;  %v2890_v29 = vadd.f32 %v4161_v41, %v2884_v37  ;;  %v4084_v37 = vld [vmem:[%s4336_s0 + $0x28] sm:$0xff]   ;;  %v4086_v39 = vld [vmem:[%s4336_s0 + $0x30] sm:$0xff]   ;;  %v2950_v41 = vld [vmem:[%s4331_s26] sm:$0x3] }
0x1448   : > { %3730 = vmatpush3.bf16.msra.mxu0 %v4084_v37  ;;  %v4088_v24 = vld [vmem:[%s4336_s0 + $0x38] sm:$0xff]  }
0x1449   : > { %2894 = vadd.xlane.f32.xlu0 %v2890_v29  ;;  %v2891_v44 = vadd.f32 %v4162_v42, %v2887_v40  ;;  %3731 = vmatprep.subr.bf16.mxu0 %v4085_v38  ;;  %v4087_v40 = vld [vmem:[%s4336_s0 + $0x78] sm:$0xff]   ;;  %v2959_v42 = vrot.slane %v2950_v41, %v706_v33 }
0x144b   : > { %2896 = vadd.xlane.f32.xlu1 %v2891_v44 }
0x144c   : > { %3732 = vmatpush3.bf16.msra.mxu0 %v4086_v39 }
0x144d   : > { %3733 = vmatprep.subr.bf16.mxu0 %v4087_v40 }
0x1450   : > { %3734 = vmatpush3.bf16.msra.mxu0 %v4088_v24 }
0x14d6   : > { %v2895_v18 = vpop.xlane.xlu0 %2894 }
0x14d7   : > { %v2899_v46 = vmul.f32 0.0078125, %v2895_v18 }
0x14d8   : > { %v2897_v19 = vpop.xlane.xlu1 %2896 }
0x14d9   : > { %v2901_v49 = vsub.f32 %v2890_v29, %v2899_v46  ;;  %v2900_v50 = vmul.f32 0.0078125, %v2897_v19  ;;  %v2955_v29 = vrot.slane %v2950_v41, %v702_v36 }
0x14db   : > { %v4801_v52 = vsub.f32 %v2891_v44, %v2900_v50  ;;  %v2903_v53 = vmul.f32 %v2901_v49, %v2901_v49 }
0x14dd   : > { %2905 = vadd.xlane.f32.xlu0 %v2903_v53  ;;  %v2904_v43 = vmul.f32 %v4801_v52, %v4801_v52 }
0x14e1   : > { %2907 = vadd.xlane.f32.xlu0 %v2904_v43 }
0x156a   : > { %v2906_v7 = vpop.xlane.xlu0 %2905 }
0x156b   : > { %v2909_v8 = vmul.f32 0.0078125, %v2906_v7 }
0x156d   : > { %v2911_v9 = vadd.f32 1e-05, %v2909_v8  ;;  %v3622_v8 = vld [vmem:[%s644_s30] ss:$0 sm:$0xff] }
0x156e   : > { %v2908_v10 = vpop.xlane.xlu0 %2907 }
0x156f   : > { %4153 = vrsqrt.f32 %v2911_v9  ;;  %v2910_v11 = vmul.f32 0.0078125, %v2908_v10 }
0x1571   : > { %v2912_v14 = vadd.f32 1e-05, %v2910_v11  ;;  %v3623_v11 = vld [vmem:[%s647_s7] ss:$0 sm:$0xff] }
0x1573   : > { %4155 = vrsqrt.f32 %v2912_v14 }
0x1579   : > { %v4154_v15 = vpop.eup %4153 }
0x157a   : > { %v2915_v17 = vmul.f32 %v4154_v15, %v2901_v49 }
0x157c   : > { %v2923_v27 = vmul.f32 %v3587_v22, %v2915_v17 }
0x157d   : > { %v4156_v23 = vpop.eup %4155 }
0x157e   : > { %v2916_v25 = vmul.f32 %v4156_v23, %v4801_v52  ;;  %v2931_v30 = vadd.f32 %v3588_v5, %v2923_v27 }
0x1580   : > { %v2924_v28 = vmul.f32 %v3587_v22, %v2916_v25 }
0x1582   : > { %v2932_v31 = vadd.f32 %v3588_v5, %v2924_v28 }
0x1584   : > { %v2933_v34 = vpack.c.bf16 %v2932_v31, %v2931_v30 }
0x1586   : > { %3075 = vmatmul.mubr.bf16.vlgmr.msra.gmra.mrb[76].mxu1 %v2933_v34 }
0x1659   : > { %v3076_v44 = vpop.f32.mrb[76].mxu1 }
0x165a   : > { %v3077_v35 = vadd.f32 %v3076_v44, %v2955_v29  ;;  %v3078_v45 = vpop.f32.mrb[77].mxu1 }
0x165b   : > { %v3079_v26 = vadd.f32 %v3078_v45, %v2959_v42  ;;  %v3080_v20 = vpop.f32.mrb[78].mxu1 }
0x165c   : > { %v3081_v18 = vadd.f32 %v3080_v20, %v2955_v29  ;;  %v3082_v46 = vpop.f32.mrb[79].mxu1  ;;  %v3085_v49 = vmax.f32 %v3077_v35, 0.0 }
0x165d   : > { %v3083_v19 = vadd.f32 %v3082_v46, %v2959_v42  ;;  %v3086_v52 = vmax.f32 %v3079_v26, 0.0 }
0x165e   : > { %v3087_v50 = vmax.f32 %v3081_v18, 0.0 }
0x165f   : > { %v3088_v53 = vmax.f32 %v3083_v19, 0.0 }
0x1660   : > { %v3089_v43 = vpack.c.bf16 %v3087_v50, %v3085_v49 }
0x1661   : > { %v3090_v47 = vpack.c.bf16 %v3088_v53, %v3086_v52 }
0x1663   : > { %3258 = vmatprep.mubr.bf16.mxu0 %v3090_v47 }
0x1664   : > { %3259 = vmatmul.mubr.bf16.vlgmr.msra.gmra.mrb[64].mxu0 %v3089_v43 }
0x1737   : > { %v3735_v36 = vpop.f32.mrb[64].mxu0 }
0x1738   : > { %v3736_v33 = vpop.f32.mrb[65].mxu0 }
0x1739   : > { %v3737_v54 = vadd.f32 %v3736_v33, %v3735_v36  ;;  %v3738_v51 = vpop.f32.mrb[66].mxu0 }
0x173a   : > { %v3739_v55 = vpop.f32.mrb[67].mxu0 }
0x173b   : > { %v3261_v58 = vadd.f32 %v3737_v54, %v3605_v32  ;;  %v3740_v56 = vadd.f32 %v3739_v55, %v3738_v51 }
0x173d   : > { %v3264_v21 = vadd.f32 %v3740_v56, %v3605_v32  ;;  %v3267_v16 = vadd.f32 %v3261_v58, %v2931_v30 }
0x173f   : > { %3271 = vadd.xlane.f32.xlu0 %v3267_v16  ;;  %v3268_v57 = vadd.f32 %v3264_v21, %v2932_v31 }
0x1741   : > { %3273 = vadd.xlane.f32.xlu1 %v3268_v57 }
0x17cc   : > { %v3272_v13 = vpop.xlane.xlu0 %3271 }
0x17cd   : > { %v3275_v12 = vmul.f32 0.0078125, %v3272_v13 }
0x17ce   : > { %v3274_v59 = vpop.xlane.xlu1 %3273 }
0x17cf   : > { %v3277_v60 = vsub.f32 %v3267_v16, %v3275_v12  ;;  %v3276_v61 = vmul.f32 0.0078125, %v3274_v59 }
0x17d1   : > { %v3278_v62 = vsub.f32 %v3268_v57, %v3276_v61  ;;  %v3279_v63 = vmul.f32 %v3277_v60, %v3277_v60 }
0x17d3   : > { %3281 = vadd.xlane.f32.xlu0 %v3279_v63  ;;  %v3280_v0 = vmul.f32 %v3278_v62, %v3278_v62 }
0x17d5   : > { %3283 = vadd.xlane.f32.xlu1 %v3280_v0 }
0x1860   : > { %v3282_v1 = vpop.xlane.xlu0 %3281 }
0x1861   : > { %v3285_v2 = vmul.f32 0.0078125, %v3282_v1 }
0x1862   : > { %v3284_v48 = vpop.xlane.xlu1 %3283 }
0x1863   : > { %v3287_v4 = vadd.f32 1e-05, %v3285_v2  ;;  %v3286_v3 = vmul.f32 0.0078125, %v3284_v48 }
0x1865   : > { %4157 = vrsqrt.f32 %v3287_v4  ;;  %v3288_v6 = vadd.f32 1e-05, %v3286_v3 }
0x1867   : > { %4159 = vrsqrt.f32 %v3288_v6 }
0x186f   : > { %v4158_v7 = vpop.eup %4157 }
0x1870   : > { %v3291_v9 = vmul.f32 %v4158_v7, %v3277_v60 }
0x1871   : > { %v4160_v10 = vpop.eup %4159 }
0x1872   : > { %v3299_v14 = vmul.f32 %v3622_v8, %v3291_v9  ;;  %v3292_v15 = vmul.f32 %v4160_v10, %v3278_v62 }
0x1874   : > { %v3307_v17 = vadd.f32 %v3623_v11, %v3299_v14  ;;  %v3300_v22 = vmul.f32 %v3622_v8, %v3292_v15 }
0x1876   : > { %3309 = vst [vmem:[%s4913_s20] sm:$0xff] %v3307_v17  ;;  %v3308_v23 = vadd.f32 %v3623_v11, %v3300_v22 }
0x1878   : > { %3310 = vst [vmem:[%s4913_s20 + $0x8] sm:$0xff] %v3308_v23 }
0x1879 PF: > { %s4917_s30 = sld [smem:[#allocation4_spill]]  ;;  %s4918_s25 = sld [smem:[#allocation3_spill]] }
0x187a   : > { %s4919_s26 = sld [smem:[#allocation5_spill]] }
0x187f   : > { %s23_s27 = sadd.s32 1, %s4917_s30  }
0x1880   : > { %p20_p6 = scmp.ge.s32.totalorder %s23_s27, 4  }
0x1882   :  { %22 = sbr.rel (!%p20_p6) target bundleno = 7 (0x7), region = 142 }

</bundles_post_ra>
